<compile_context>
chip_gen: v5e
topology: v5e:2x2
jax: 0.10.0
libtpu: 0.0.40
codegen_flags: <defaults>
</compile_context>

<pallas_src>
import jax
import jax.numpy as jnp
import numpy as np
from jax.experimental import pallas as pl
from jax.experimental.pallas import tpu as pltpu

EPS = 1e-5
LANE = 128


def _round_up(x, m):
    return (x + m - 1) // m * m


def _pick_img_batch(n_img, hw):
    """Images per grid step: keep >=2 grid steps (v7x dual TensorCore), a
    healthy GEMM-M, and sublane-aligned tiles (multiple of 8) unless the tile
    covers the whole M axis."""
    cands = []
    for b in range(1, n_img + 1):
        if n_img % b:
            continue
        tm, g = b * hw, n_img // b
        if g > 1 and tm % 8 != 0:
            continue                       # partial tiles must be 8-aligned
        cands.append((b, tm, g))
    if not cands:
        return n_img

    def score(c):
        _, tm, g = c
        s = 0
        if g >= 2:
            s += 4                         # keep both v7x TCs busy
        if tm >= 256:
            s += 2                         # fill the MXU M dimension
        if tm <= 4096:
            s += 1                         # keep VMEM tiles modest
        return (s, -abs(tm - 1024))

    return max(cands, key=score)[0]


def _compiler_params():
    # generation-aware VMEM budget: ~96 MiB on v5e/v6e (128 MiB physical),
    # ~48 MiB on v7x (64 MiB physical), never below the 32 MiB default-ish.
    try:
        cap = pltpu.get_tpu_info().vmem_capacity_bytes
    except Exception:
        cap = 64 * 1024 * 1024
    limit = max(32 * 1024 * 1024, min(cap * 3 // 4, 96 * 1024 * 1024))
    return pltpu.CompilerParams(
        dimension_semantics=("parallel",),
        vmem_limit_bytes=int(limit),
    )


def _bn_scale_shift(partials, count, gamma, beta):
    # partials: (grid, 2, C) with [sum, sum_of_squares]; tiny XLA glue.
    s = jnp.sum(partials, axis=0)                      # (2, C)
    mean = s[0:1] / count                              # (1, C)
    var = jnp.maximum(s[1:2] / count - mean * mean, 0.0)
    scale = gamma * jax.lax.rsqrt(var + EPS)           # (1, C)
    shift = beta - mean * scale
    return scale, shift


# ---------------- Kernel 1: conv1x1 (x @ w1) + BN1 partial stats --------------
def conv1_kernel(x_ref, w1_ref, h1_ref, st_ref):
    h = jnp.dot(x_ref[...], w1_ref[...], preferred_element_type=jnp.float32)
    h1_ref[...] = h.astype(jnp.bfloat16)
    st_ref[...] = jnp.concatenate(
        [jnp.sum(h, axis=0, keepdims=True),
         jnp.sum(h * h, axis=0, keepdims=True)], axis=0)[None]


# ------- Kernel 2: BN1+ReLU -> 3x3 conv as 9 accumulating GEMMs + stats -------
def make_conv2_kernel(n_img, H, W, C):
    HW = H * W
    TM = n_img * HW

    def kernel(h1_ref, s1_ref, t1_ref, w2_ref, h2_ref, st_ref, pad_ref):
        # BN1 + ReLU in f32, single cast to bf16 (no per-window recast).
        a = jnp.maximum(h1_ref[...].astype(jnp.float32) * s1_ref[...]
                        + t1_ref[...], 0.0).astype(jnp.bfloat16)
        # zero-padded images live entirely in a bf16 VMEM scratch; only the
        # halo is written with zeros (interior is fully overwritten below).
        zr = jnp.zeros((n_img, 1, W + 2, C), jnp.bfloat16)
        zc = jnp.zeros((n_img, H, 1, C), jnp.bfloat16)
        pad_ref[:, 0:1, 0:W + 2, :] = zr
        pad_ref[:, H + 1:H + 2, 0:W + 2, :] = zr
        pad_ref[:, 1:H + 1, 0:1, :] = zc
        pad_ref[:, 1:H + 1, W + 1:W + 2, :] = zc
        pad_ref[:, 1:H + 1, 1:W + 1, :] = a.reshape(n_img, H, W, C)
        # 3x3 conv = 9 shifted-window (TM,C)x(C,C) GEMMs accumulated in f32;
        # no im2col concatenate, no (TM, 9C) buffer materialized in VMEM.
        # TODO(synk): dx shifts could use pltpu.roll (XLU slot) instead of
        # offset-1 sublane slices for a further micro-win.
        acc = jnp.zeros((TM, C), jnp.float32)
        k = 0
        for dy in range(3):
            for dx in range(3):
                win = pad_ref[:, dy:dy + H, dx:dx + W, :].reshape(TM, C)
                acc = acc + jnp.dot(win, w2_ref[k],
                                    preferred_element_type=jnp.float32)
                k += 1
        h2_ref[...] = acc.astype(jnp.bfloat16)
        st_ref[...] = jnp.concatenate(
            [jnp.sum(acc, axis=0, keepdims=True),
             jnp.sum(acc * acc, axis=0, keepdims=True)], axis=0)[None]

    return kernel


# -------- shared tail: BN2+ReLU -> conv1x1 (w3) on one tile -------------------
def _y3_tile(h2, s2, t2, w3):
    a = jnp.maximum(h2.astype(jnp.float32) * s2 + t2, 0.0)
    return jnp.dot(a.astype(jnp.bfloat16), w3, preferred_element_type=jnp.float32)


# ---------------- Kernel 3: BN3 partial stats over y3 (not stored) ------------
def stats3_kernel(h2_ref, s2_ref, t2_ref, w3_ref, st_ref):
    y3 = _y3_tile(h2_ref[...], s2_ref[...], t2_ref[...], w3_ref[...])
    st_ref[...] = jnp.concatenate(
        [jnp.sum(y3, axis=0, keepdims=True),
         jnp.sum(y3 * y3, axis=0, keepdims=True)], axis=0)[None]


# -------- Kernel 4: (recompute y3) -> BN3 -> + identity -> ReLU ---------------
def final_kernel(h2_ref, x_ref, s2_ref, t2_ref, w3_ref, s3_ref, t3_ref, out_ref):
    # TODO(synk): on v5e with wide layers, storing y3 in bf16 from stage 3 and
    # making this kernel apply-only is cheaper (weaker MXU/byte balance).
    y3 = _y3_tile(h2_ref[...], s2_ref[...], t2_ref[...], w3_ref[...])
    y = y3 * s3_ref[...] + t3_ref[...] + x_ref[...].astype(jnp.float32)
    out_ref[...] = jnp.maximum(y, 0.0)


def bottleneck_forward(x_nchw, p):
    N, cin, H, W = x_nchw.shape
    width = p["w1"].shape[1]
    cout = p["w3"].shape[1]
    assert cin == cout, "downsample=None requires inplanes == planes*expansion"
    HW = H * W
    M = N * HW

    cin_p = _round_up(cin, LANE)
    width_p = _round_up(width, LANE)
    cout_p = _round_up(cout, LANE)        # == cin_p since cin == cout

    # channels-last, channel-padded, bf16 activations (single layout pass)
    x2d = jnp.transpose(x_nchw, (0, 2, 3, 1)).reshape(M, cin)
    x2d = jnp.pad(x2d, ((0, 0), (0, cin_p - cin))).astype(jnp.bfloat16)

    # weights (bf16, channel-padded) and BN affine params (f32, channel-padded;
    # gammas MUST be padded with 0 so padded lanes stay identically zero).
    w1 = jnp.pad(p["w1"].astype(jnp.bfloat16),
                 ((0, cin_p - cin), (0, width_p - width)))
    w2 = jnp.pad(p["w2"].astype(jnp.bfloat16),
                 ((0, 0), (0, 0), (0, width_p - width), (0, width_p - width)))
    w2 = w2.reshape(9, width_p, width_p)             # nine (C, C) GEMM blocks
    w3 = jnp.pad(p["w3"].astype(jnp.bfloat16),
                 ((0, width_p - width), (0, cout_p - cout)))
    g1 = jnp.pad(p["g1"].astype(jnp.float32), ((0, 0), (0, width_p - width)))
    b1 = jnp.pad(p["b1"].astype(jnp.float32), ((0, 0), (0, width_p - width)))
    g2 = jnp.pad(p["g2"].astype(jnp.float32), ((0, 0), (0, width_p - width)))
    b2 = jnp.pad(p["b2"].astype(jnp.float32), ((0, 0), (0, width_p - width)))
    g3 = jnp.pad(p["g3"].astype(jnp.float32), ((0, 0), (0, cout_p - cout)))
    b3 = jnp.pad(p["b3"].astype(jnp.float32), ((0, 0), (0, cout_p - cout)))

    # one shared 1-D grid over image batches: TM = B_IMG*H*W rows per step
    B_IMG = _pick_img_batch(N, HW)
    TM = B_IMG * HW
    G = N // B_IMG
    W_pad = _round_up(W + 2, 8)           # sublane-aligned scratch width
    cparams = _compiler_params()
    vec_spec = lambda c: pl.BlockSpec((1, c), lambda i: (0, 0))
    cnt = jnp.float32(M)

    # ---- stage 1: conv1x1 + BN1 partial stats ----
    h1, st1 = pl.pallas_call(
        conv1_kernel,
        grid=(G,),
        in_specs=[pl.BlockSpec((TM, cin_p), lambda i: (i, 0)),
                  pl.BlockSpec((cin_p, width_p), lambda i: (0, 0))],
        out_specs=[pl.BlockSpec((TM, width_p), lambda i: (i, 0)),
                   pl.BlockSpec((1, 2, width_p), lambda i: (i, 0, 0))],
        out_shape=[jax.ShapeDtypeStruct((M, width_p), jnp.bfloat16),
                   jax.ShapeDtypeStruct((G, 2, width_p), jnp.float32)],
        compiler_params=cparams,
    )(x2d, w1)
    s1, t1 = _bn_scale_shift(st1, cnt, g1, b1)

    # ---- stage 2: BN1+ReLU -> 3x3 conv (9 GEMMs) + BN2 partial stats ----
    h2, st2 = pl.pallas_call(
        make_conv2_kernel(B_IMG, H, W, width_p),
        grid=(G,),
        in_specs=[pl.BlockSpec((TM, width_p), lambda i: (i, 0)),
                  vec_spec(width_p), vec_spec(width_p),
                  pl.BlockSpec((9, width_p, width_p), lambda i: (0, 0, 0))],
        out_specs=[pl.BlockSpec((TM, width_p), lambda i: (i, 0)),
                   pl.BlockSpec((1, 2, width_p), lambda i: (i, 0, 0))],
        out_shape=[jax.ShapeDtypeStruct((M, width_p), jnp.bfloat16),
                   jax.ShapeDtypeStruct((G, 2, width_p), jnp.float32)],
        scratch_shapes=[pltpu.VMEM((B_IMG, H + 2, W_pad, width_p), jnp.bfloat16)],
        compiler_params=cparams,
    )(h1, s1, t1, w2)
    s2, t2 = _bn_scale_shift(st2, cnt, g2, b2)

    # ---- stage 3: BN3 partial stats of y3 = relu(bn2(h2)) @ w3 ----
    st3 = pl.pallas_call(
        stats3_kernel,
        grid=(G,),
        in_specs=[pl.BlockSpec((TM, width_p), lambda i: (i, 0)),
                  vec_spec(width_p), vec_spec(width_p),
                  pl.BlockSpec((width_p, cout_p), lambda i: (0, 0))],
        out_specs=pl.BlockSpec((1, 2, cout_p), lambda i: (i, 0, 0)),
        out_shape=jax.ShapeDtypeStruct((G, 2, cout_p), jnp.float32),
        compiler_params=cparams,
    )(h2, s2, t2, w3)
    s3, t3 = _bn_scale_shift(st3, cnt, g3, b3)

    # ---- stage 4: recompute y3 -> BN3 -> + identity -> ReLU ----
    out = pl.pallas_call(
        final_kernel,
        grid=(G,),
        in_specs=[pl.BlockSpec((TM, width_p), lambda i: (i, 0)),
                  pl.BlockSpec((TM, cout_p), lambda i: (i, 0)),
                  vec_spec(width_p), vec_spec(width_p),
                  pl.BlockSpec((width_p, cout_p), lambda i: (0, 0)),
                  vec_spec(cout_p), vec_spec(cout_p)],
        out_specs=pl.BlockSpec((TM, cout_p), lambda i: (i, 0)),
        out_shape=jax.ShapeDtypeStruct((M, cout_p), jnp.float32),
        compiler_params=cparams,
    )(h2, x2d, s2, t2, w3, s3, t3)

    out = out[:, :cout].reshape(N, H, W, cout)
    return jnp.transpose(out, (0, 3, 1, 2))


# ---------------- Pure-JAX f32 reference (same semantics) ----------------
def bottleneck_reference(x_nchw, p):
    x = jnp.transpose(x_nchw, (0, 2, 3, 1)).astype(jnp.float32)   # NHWC

    def bn(y, g, b):
        m = jnp.mean(y, axis=(0, 1, 2), keepdims=True)
        v = jnp.mean((y - m) ** 2, axis=(0, 1, 2), keepdims=True)
        return (y - m) * jax.lax.rsqrt(v + EPS) * g.reshape(1, 1, 1, -1) \
            + b.reshape(1, 1, 1, -1)

    h = jnp.einsum("nhwc,cd->nhwd", x, p["w1"])
    h = jax.nn.relu(bn(h, p["g1"], p["b1"]))
    h = jax.lax.conv_general_dilated(
        h, p["w2"], window_strides=(1, 1), padding=((1, 1), (1, 1)),
        dimension_numbers=("NHWC", "HWIO", "NHWC"))
    h = jax.nn.relu(bn(h, p["g2"], p["b2"]))
    y = jnp.einsum("nhwc,cd->nhwd", h, p["w3"])
    y = bn(y, p["g3"], p["b3"]) + x
    return jnp.transpose(jax.nn.relu(y), (0, 3, 1, 2))


if __name__ == "__main__":
    # Small, consistent shapes: inplanes=32, planes=8 -> width=8, out=planes*4=32
    N, H, W = 2, 8, 8
    inplanes, planes = 32, 8
    width = planes                     # base_width=64, groups=1
    cout = planes * 4                  # expansion = 4 (== inplanes, downsample=None)

    key = jax.random.PRNGKey(0)
    ks = jax.random.split(key, 10)
    s = 0.1
    p = {
        # conv weights channels-last: (cin, cout) for 1x1, (kh, kw, cin, cout) for 3x3
        "w1": s * jax.random.normal(ks[0], (inplanes, width), jnp.float32),
        "w2": s * jax.random.normal(ks[1], (3, 3, width, width), jnp.float32),
        "w3": s * jax.random.normal(ks[2], (width, cout), jnp.float32),
        # BatchNorm affine params (deterministic, non-trivial)
        "g1": (1.0 + 0.1 * jax.random.normal(ks[3], (1, width))).astype(jnp.float32),
        "b1": (0.1 * jax.random.normal(ks[4], (1, width))).astype(jnp.float32),
        "g2": (1.0 + 0.1 * jax.random.normal(ks[5], (1, width))).astype(jnp.float32),
        "b2": (0.1 * jax.random.normal(ks[6], (1, width))).astype(jnp.float32),
        "g3": (1.0 + 0.1 * jax.random.normal(ks[7], (1, cout))).astype(jnp.float32),
        "b3": (0.1 * jax.random.normal(ks[8], (1, cout))).astype(jnp.float32),
    }
    x = jax.random.normal(ks[9], (N, inplanes, H, W), jnp.float32)

    out = jax.block_until_ready(jax.jit(bottleneck_forward)(x, p))
    ref = jax.block_until_ready(bottleneck_reference(x, p))

    assert out.shape == (N, cout, H, W), out.shape
    np.testing.assert_allclose(np.asarray(out), np.asarray(ref), rtol=5e-2, atol=5e-2)
    print("KERNEL_OK")
</pallas_src>

<mosaic_0001>
module attributes {stable_mosaic.version = 11 : i64} {
  func.func @conv1_kernel(%arg0: i32, %arg1: memref<64x128xbf16, #tpu.memory_space<vmem>>, %arg2: memref<128x128xbf16, #tpu.memory_space<vmem>>, %arg3: memref<64x128xbf16, #tpu.memory_space<vmem>>, %arg4: memref<1x2x128xf32, #tpu.memory_space<vmem>>) attributes {dimension_semantics = [#tpu.dimension_semantics<parallel>], iteration_bounds = array<i64: 2>, scalar_prefetch = 0 : i64, scratch_operands = 0 : i64, tpu.core_type = #tpu.core_type<tc>, window_params = [{transform_indices = @transform_0, window_bounds = array<i64: 64, 128>}, {pipeline_mode = #tpu.pipeline_mode<synchronous>, transform_indices = @transform_1, window_bounds = array<i64: 128, 128>}, {transform_indices = @transform_2, window_bounds = array<i64: 64, 128>}, {transform_indices = @transform_3, window_bounds = array<i64: 1, 2, 128>}]} {
    %c0 = arith.constant 0 : index
    %c0_0 = arith.constant 0 : index
    %0 = vector.load %arg1[%c0, %c0_0] : memref<64x128xbf16, #tpu.memory_space<vmem>>, vector<64x128xbf16>
    %c0_1 = arith.constant 0 : index
    %c0_2 = arith.constant 0 : index
    %1 = vector.load %arg2[%c0_1, %c0_2] : memref<128x128xbf16, #tpu.memory_space<vmem>>, vector<128x128xbf16>
    %cst = arith.constant dense<0.000000e+00> : vector<64x128xf32>
    %2 = tpu.matmul %0, %1, %cst {dimension_numbers = #tpu.dot_dimension_numbers<[1], [0], [0], [1], [0, 0, 1, 1], [], []>} : vector<64x128xbf16>, vector<128x128xbf16>, vector<64x128xf32> -> vector<64x128xf32>
    %3 = arith.truncf %2 : vector<64x128xf32> to vector<64x128xbf16>
    %c0_3 = arith.constant 0 : index
    %c0_4 = arith.constant 0 : index
    %4 = vector.load %arg3[%c0_3, %c0_4] : memref<64x128xbf16, #tpu.memory_space<vmem>>, vector<64x128xbf16>
    tpu.vector_store %arg3[%c0_3, %c0_4], %3 {strides = array<i32>} : memref<64x128xbf16, #tpu.memory_space<vmem>>, vector<64x128xbf16>,
    %cst_5 = arith.constant dense<0.000000e+00> : vector<128xf32>
    %5 = vector.multi_reduction <add>, %2, %cst_5 [0] : vector<64x128xf32> to vector<128xf32>
    %6 = vector.shape_cast %5 : vector<128xf32> to vector<1x128xf32>
    %7 = arith.mulf %2, %2 : vector<64x128xf32>
    %cst_6 = arith.constant dense<0.000000e+00> : vector<128xf32>
    %8 = vector.multi_reduction <add>, %7, %cst_6 [0] : vector<64x128xf32> to vector<128xf32>
    %9 = vector.shape_cast %8 : vector<128xf32> to vector<1x128xf32>
    %10 = tpu.concatenate %6, %9 in 0 : vector<1x128xf32>, vector<1x128xf32> -> vector<2x128xf32>
    %11 = vector.shape_cast %10 : vector<2x128xf32> to vector<1x2x128xf32>
    %c0_7 = arith.constant 0 : index
    %c0_8 = arith.constant 0 : index
    %c0_9 = arith.constant 0 : index
    %12 = vector.load %arg4[%c0_7, %c0_8, %c0_9] : memref<1x2x128xf32, #tpu.memory_space<vmem>>, vector<1x2x128xf32>
    tpu.vector_store %arg4[%c0_7, %c0_8, %c0_9], %11 {strides = array<i32>} : memref<1x2x128xf32, #tpu.memory_space<vmem>>, vector<1x2x128xf32>,
    return
  }
  func.func @transform_0(%arg0: i32) -> (i32, i32) {
    %c0_i32 = arith.constant 0 : i32
    %c0_i32_0 = arith.constant 0 : i32
    return %arg0, %c0_i32 : i32, i32
  }
  func.func @transform_1(%arg0: i32) -> (i32, i32) {
    %c0_i32 = arith.constant 0 : i32
    %c0_i32_0 = arith.constant 0 : i32
    %c0_i32_1 = arith.constant 0 : i32
    return %c0_i32, %c0_i32_0 : i32, i32
  }
  func.func @transform_2(%arg0: i32) -> (i32, i32) {
    %c0_i32 = arith.constant 0 : i32
    %c0_i32_0 = arith.constant 0 : i32
    return %arg0, %c0_i32 : i32, i32
  }
  func.func @transform_3(%arg0: i32) -> (i32, i32, i32) {
    %c0_i32 = arith.constant 0 : i32
    %c0_i32_0 = arith.constant 0 : i32
    %c0_i32_1 = arith.constant 0 : i32
    return %arg0, %c0_i32, %c0_i32_0 : i32, i32, i32
  }
}

module attributes {stable_mosaic.version = 11 : i64} {
  func.func @kernel(%arg0: i32, %arg1: memref<64x128xbf16, #tpu.memory_space<vmem>>, %arg2: memref<1x128xf32, #tpu.memory_space<vmem>>, %arg3: memref<1x128xf32, #tpu.memory_space<vmem>>, %arg4: memref<9x128x128xbf16, #tpu.memory_space<vmem>>, %arg5: memref<64x128xbf16, #tpu.memory_space<vmem>>, %arg6: memref<1x2x128xf32, #tpu.memory_space<vmem>>, %arg7: memref<1x10x16x128xbf16, #tpu.memory_space<vmem>>) attributes {dimension_semantics = [#tpu.dimension_semantics<parallel>], iteration_bounds = array<i64: 2>, scalar_prefetch = 0 : i64, scratch_operands = 1 : i64, tpu.core_type = #tpu.core_type<tc>, window_params = [{transform_indices = @transform_0, window_bounds = array<i64: 64, 128>}, {pipeline_mode = #tpu.pipeline_mode<synchronous>, transform_indices = @transform_1, window_bounds = array<i64: 1, 128>}, {pipeline_mode = #tpu.pipeline_mode<synchronous>, transform_indices = @transform_2, window_bounds = array<i64: 1, 128>}, {pipeline_mode = #tpu.pipeline_mode<synchronous>, transform_indices = @transform_3, window_bounds = array<i64: 9, 128, 128>}, {transform_indices = @transform_4, window_bounds = array<i64: 64, 128>}, {transform_indices = @transform_5, window_bounds = array<i64: 1, 2, 128>}]} {
    %c0 = arith.constant 0 : index
    %c0_0 = arith.constant 0 : index
    %0 = vector.load %arg1[%c0, %c0_0] : memref<64x128xbf16, #tpu.memory_space<vmem>>, vector<64x128xbf16>
    %1 = arith.extf %0 : vector<64x128xbf16> to vector<64x128xf32>
    %c0_1 = arith.constant 0 : index
    %c0_2 = arith.constant 0 : index
    %2 = vector.load %arg2[%c0_1, %c0_2] : memref<1x128xf32, #tpu.memory_space<vmem>>, vector<1x128xf32>
    %3 = vector.broadcast %2 : vector<1x128xf32> to vector<64x128xf32>
    %4 = arith.mulf %1, %3 : vector<64x128xf32>
    %c0_3 = arith.constant 0 : index
    %c0_4 = arith.constant 0 : index
    %5 = vector.load %arg3[%c0_3, %c0_4] : memref<1x128xf32, #tpu.memory_space<vmem>>, vector<1x128xf32>
    %6 = vector.broadcast %5 : vector<1x128xf32> to vector<64x128xf32>
    %7 = arith.addf %4, %6 : vector<64x128xf32>
    %cst = arith.constant 0.000000e+00 : f32
    %8 = vector.broadcast %cst : f32 to vector<64x128xf32>
    %9 = arith.maximumf %7, %8 : vector<64x128xf32>
    %10 = arith.truncf %9 : vector<64x128xf32> to vector<64x128xbf16>
    %cst_5 = arith.constant 0.000000e+00 : bf16
    %11 = vector.broadcast %cst_5 : bf16 to vector<1x1x10x128xbf16>
    %cst_6 = arith.constant 0.000000e+00 : bf16
    %12 = vector.broadcast %cst_6 : bf16 to vector<1x8x1x128xbf16>
    %c0_7 = arith.constant 0 : index
    %c0_8 = arith.constant 0 : index
    %c0_9 = arith.constant 0 : index
    %c0_10 = arith.constant 0 : index
    %13 = vector.load %arg7[%c0_7, %c0_8, %c0_9, %c0_10] : memref<1x10x16x128xbf16, #tpu.memory_space<vmem>>, vector<1x1x10x128xbf16>
    tpu.vector_store %arg7[%c0_7, %c0_8, %c0_9, %c0_10], %11 {strides = array<i32>} : memref<1x10x16x128xbf16, #tpu.memory_space<vmem>>, vector<1x1x10x128xbf16>,
    %c0_11 = arith.constant 0 : index
    %c9 = arith.constant 9 : index
    %c0_12 = arith.constant 0 : index
    %c0_13 = arith.constant 0 : index
    %14 = vector.load %arg7[%c0_11, %c9, %c0_12, %c0_13] : memref<1x10x16x128xbf16, #tpu.memory_space<vmem>>, vector<1x1x10x128xbf16>
    tpu.vector_store %arg7[%c0_11, %c9, %c0_12, %c0_13], %11 {strides = array<i32>} : memref<1x10x16x128xbf16, #tpu.memory_space<vmem>>, vector<1x1x10x128xbf16>,
    %c0_14 = arith.constant 0 : index
    %c1 = arith.constant 1 : index
    %c0_15 = arith.constant 0 : index
    %c0_16 = arith.constant 0 : index
    %15 = vector.load %arg7[%c0_14, %c1, %c0_15, %c0_16] : memref<1x10x16x128xbf16, #tpu.memory_space<vmem>>, vector<1x8x1x128xbf16>
    tpu.vector_store %arg7[%c0_14, %c1, %c0_15, %c0_16], %12 {strides = array<i32>} : memref<1x10x16x128xbf16, #tpu.memory_space<vmem>>, vector<1x8x1x128xbf16>,
    %c0_17 = arith.constant 0 : index
    %c1_18 = arith.constant 1 : index
    %c9_19 = arith.constant 9 : index
    %c0_20 = arith.constant 0 : index
    %16 = vector.load %arg7[%c0_17, %c1_18, %c9_19, %c0_20] : memref<1x10x16x128xbf16, #tpu.memory_space<vmem>>, vector<1x8x1x128xbf16>
    tpu.vector_store %arg7[%c0_17, %c1_18, %c9_19, %c0_20], %12 {strides = array<i32>} : memref<1x10x16x128xbf16, #tpu.memory_space<vmem>>, vector<1x8x1x128xbf16>,
    %17 = vector.shape_cast %10 : vector<64x128xbf16> to vector<1x8x8x128xbf16>
    %c0_21 = arith.constant 0 : index
    %c1_22 = arith.constant 1 : index
    %c1_23 = arith.constant 1 : index
    %c0_24 = arith.constant 0 : index
    %18 = vector.load %arg7[%c0_21, %c1_22, %c1_23, %c0_24] : memref<1x10x16x128xbf16, #tpu.memory_space<vmem>>, vector<1x8x8x128xbf16>
    tpu.vector_store %arg7[%c0_21, %c1_22, %c1_23, %c0_24], %17 {strides = array<i32>} : memref<1x10x16x128xbf16, #tpu.memory_space<vmem>>, vector<1x8x8x128xbf16>,
    %cst_25 = arith.constant 0.000000e+00 : f32
    %19 = vector.broadcast %cst_25 : f32 to vector<64x128xf32>
    %c0_26 = arith.constant 0 : index
    %c0_27 = arith.constant 0 : index
    %c0_28 = arith.constant 0 : index
    %c0_29 = arith.constant 0 : index
    %20 = vector.load %arg7[%c0_26, %c0_27, %c0_28, %c0_29] : memref<1x10x16x128xbf16, #tpu.memory_space<vmem>>, vector<1x8x8x128xbf16>
    %21 = vector.shape_cast %20 : vector<1x8x8x128xbf16> to vector<64x128xbf16>
    %c0_30 = arith.constant 0 : index
    %c0_31 = arith.constant 0 : index
    %c0_32 = arith.constant 0 : index
    %22 = vector.load %arg4[%c0_30, %c0_31, %c0_32] : memref<9x128x128xbf16, #tpu.memory_space<vmem>>, vector<1x128x128xbf16>
    %23 = vector.shape_cast %22 : vector<1x128x128xbf16> to vector<128x128xbf16>
    %cst_33 = arith.constant dense<0.000000e+00> : vector<64x128xf32>
    %24 = tpu.matmul %21, %23, %cst_33 {dimension_numbers = #tpu.dot_dimension_numbers<[1], [0], [0], [1], [0, 0, 1, 1], [], []>} : vector<64x128xbf16>, vector<128x128xbf16>, vector<64x128xf32> -> vector<64x128xf32>
    %25 = arith.addf %19, %24 : vector<64x128xf32>
    %c0_34 = arith.constant 0 : index
    %c0_35 = arith.constant 0 : index
    %c1_36 = arith.constant 1 : index
    %c0_37 = arith.constant 0 : index
    %26 = vector.load %arg7[%c0_34, %c0_35, %c1_36, %c0_37] : memref<1x10x16x128xbf16, #tpu.memory_space<vmem>>, vector<1x8x8x128xbf16>
    %27 = vector.shape_cast %26 : vector<1x8x8x128xbf16> to vector<64x128xbf16>
    %c1_38 = arith.constant 1 : index
    %c0_39 = arith.constant 0 : index
    %c0_40 = arith.constant 0 : index
    %28 = vector.load %arg4[%c1_38, %c0_39, %c0_40] : memref<9x128x128xbf16, #tpu.memory_space<vmem>>, vector<1x128x128xbf16>
    %29 = vector.shape_cast %28 : vector<1x128x128xbf16> to vector<128x128xbf16>
    %cst_41 = arith.constant dense<0.000000e+00> : vector<64x128xf32>
    %30 = tpu.matmul %27, %29, %cst_41 {dimension_numbers = #tpu.dot_dimension_numbers<[1], [0], [0], [1], [0, 0, 1, 1], [], []>} : vector<64x128xbf16>, vector<128x128xbf16>, vector<64x128xf32> -> vector<64x128xf32>
    %31 = arith.addf %25, %30 : vector<64x128xf32>
    %c0_42 = arith.constant 0 : index
    %c0_43 = arith.constant 0 : index
    %c2 = arith.constant 2 : index
    %c0_44 = arith.constant 0 : index
    %32 = vector.load %arg7[%c0_42, %c0_43, %c2, %c0_44] : memref<1x10x16x128xbf16, #tpu.memory_space<vmem>>, vector<1x8x8x128xbf16>
    %33 = vector.shape_cast %32 : vector<1x8x8x128xbf16> to vector<64x128xbf16>
    %c2_45 = arith.constant 2 : index
    %c0_46 = arith.constant 0 : index
    %c0_47 = arith.constant 0 : index
    %34 = vector.load %arg4[%c2_45, %c0_46, %c0_47] : memref<9x128x128xbf16, #tpu.memory_space<vmem>>, vector<1x128x128xbf16>
    %35 = vector.shape_cast %34 : vector<1x128x128xbf16> to vector<128x128xbf16>
    %cst_48 = arith.constant dense<0.000000e+00> : vector<64x128xf32>
    %36 = tpu.matmul %33, %35, %cst_48 {dimension_numbers = #tpu.dot_dimension_numbers<[1], [0], [0], [1], [0, 0, 1, 1], [], []>} : vector<64x128xbf16>, vector<128x128xbf16>, vector<64x128xf32> -> vector<64x128xf32>
    %37 = arith.addf %31, %36 : vector<64x128xf32>
    %c0_49 = arith.constant 0 : index
    %c1_50 = arith.constant 1 : index
    %c0_51 = arith.constant 0 : index
    %c0_52 = arith.constant 0 : index
    %38 = vector.load %arg7[%c0_49, %c1_50, %c0_51, %c0_52] : memref<1x10x16x128xbf16, #tpu.memory_space<vmem>>, vector<1x8x8x128xbf16>
    %39 = vector.shape_cast %38 : vector<1x8x8x128xbf16> to vector<64x128xbf16>
    %c3 = arith.constant 3 : index
    %c0_53 = arith.constant 0 : index
    %c0_54 = arith.constant 0 : index
    %40 = vector.load %arg4[%c3, %c0_53, %c0_54] : memref<9x128x128xbf16, #tpu.memory_space<vmem>>, vector<1x128x128xbf16>
    %41 = vector.shape_cast %40 : vector<1x128x128xbf16> to vector<128x128xbf16>
    %cst_55 = arith.constant dense<0.000000e+00> : vector<64x128xf32>
    %42 = tpu.matmul %39, %41, %cst_55 {dimension_numbers = #tpu.dot_dimension_numbers<[1], [0], [0], [1], [0, 0, 1, 1], [], []>} : vector<64x128xbf16>, vector<128x128xbf16>, vector<64x128xf32> -> vector<64x128xf32>
    %43 = arith.addf %37, %42 : vector<64x128xf32>
    %c0_56 = arith.constant 0 : index
    %c1_57 = arith.constant 1 : index
    %c1_58 = arith.constant 1 : index
    %c0_59 = arith.constant 0 : index
    %44 = vector.load %arg7[%c0_56, %c1_57, %c1_58, %c0_59] : memref<1x10x16x128xbf16, #tpu.memory_space<vmem>>, vector<1x8x8x128xbf16>
    %45 = vector.shape_cast %44 : vector<1x8x8x128xbf16> to vector<64x128xbf16>
    %c4 = arith.constant 4 : index
    %c0_60 = arith.constant 0 : index
    %c0_61 = arith.constant 0 : index
    %46 = vector.load %arg4[%c4, %c0_60, %c0_61] : memref<9x128x128xbf16, #tpu.memory_space<vmem>>, vector<1x128x128xbf16>
    %47 = vector.shape_cast %46 : vector<1x128x128xbf16> to vector<128x128xbf16>
    %cst_62 = arith.constant dense<0.000000e+00> : vector<64x128xf32>
    %48 = tpu.matmul %45, %47, %cst_62 {dimension_numbers = #tpu.dot_dimension_numbers<[1], [0], [0], [1], [0, 0, 1, 1], [], []>} : vector<64x128xbf16>, vector<128x128xbf16>, vector<64x128xf32> -> vector<64x128xf32>
    %49 = arith.addf %43, %48 : vector<64x128xf32>
    %c0_63 = arith.constant 0 : index
    %c1_64 = arith.constant 1 : index
    %c2_65 = arith.constant 2 : index
    %c0_66 = arith.constant 0 : index
    %50 = vector.load %arg7[%c0_63, %c1_64, %c2_65, %c0_66] : memref<1x10x16x128xbf16, #tpu.memory_space<vmem>>, vector<1x8x8x128xbf16>
    %51 = vector.shape_cast %50 : vector<1x8x8x128xbf16> to vector<64x128xbf16>
    %c5 = arith.constant 5 : index
    %c0_67 = arith.constant 0 : index
    %c0_68 = arith.constant 0 : index
    %52 = vector.load %arg4[%c5, %c0_67, %c0_68] : memref<9x128x128xbf16, #tpu.memory_space<vmem>>, vector<1x128x128xbf16>
    %53 = vector.shape_cast %52 : vector<1x128x128xbf16> to vector<128x128xbf16>
    %cst_69 = arith.constant dense<0.000000e+00> : vector<64x128xf32>
    %54 = tpu.matmul %51, %53, %cst_69 {dimension_numbers = #tpu.dot_dimension_numbers<[1], [0], [0], [1], [0, 0, 1, 1], [], []>} : vector<64x128xbf16>, vector<128x128xbf16>, vector<64x128xf32> -> vector<64x128xf32>
    %55 = arith.addf %49, %54 : vector<64x128xf32>
    %c0_70 = arith.constant 0 : index
    %c2_71 = arith.constant 2 : index
    %c0_72 = arith.constant 0 : index
    %c0_73 = arith.constant 0 : index
    %56 = vector.load %arg7[%c0_70, %c2_71, %c0_72, %c0_73] : memref<1x10x16x128xbf16, #tpu.memory_space<vmem>>, vector<1x8x8x128xbf16>
    %57 = vector.shape_cast %56 : vector<1x8x8x128xbf16> to vector<64x128xbf16>
    %c6 = arith.constant 6 : index
    %c0_74 = arith.constant 0 : index
    %c0_75 = arith.constant 0 : index
    %58 = vector.load %arg4[%c6, %c0_74, %c0_75] : memref<9x128x128xbf16, #tpu.memory_space<vmem>>, vector<1x128x128xbf16>
    %59 = vector.shape_cast %58 : vector<1x128x128xbf16> to vector<128x128xbf16>
    %cst_76 = arith.constant dense<0.000000e+00> : vector<64x128xf32>
    %60 = tpu.matmul %57, %59, %cst_76 {dimension_numbers = #tpu.dot_dimension_numbers<[1], [0], [0], [1], [0, 0, 1, 1], [], []>} : vector<64x128xbf16>, vector<128x128xbf16>, vector<64x128xf32> -> vector<64x128xf32>
    %61 = arith.addf %55, %60 : vector<64x128xf32>
    %c0_77 = arith.constant 0 : index
    %c2_78 = arith.constant 2 : index
    %c1_79 = arith.constant 1 : index
    %c0_80 = arith.constant 0 : index
    %62 = vector.load %arg7[%c0_77, %c2_78, %c1_79, %c0_80] : memref<1x10x16x128xbf16, #tpu.memory_space<vmem>>, vector<1x8x8x128xbf16>
    %63 = vector.shape_cast %62 : vector<1x8x8x128xbf16> to vector<64x128xbf16>
    %c7 = arith.constant 7 : index
    %c0_81 = arith.constant 0 : index
    %c0_82 = arith.constant 0 : index
    %64 = vector.load %arg4[%c7, %c0_81, %c0_82] : memref<9x128x128xbf16, #tpu.memory_space<vmem>>, vector<1x128x128xbf16>
    %65 = vector.shape_cast %64 : vector<1x128x128xbf16> to vector<128x128xbf16>
    %cst_83 = arith.constant dense<0.000000e+00> : vector<64x128xf32>
    %66 = tpu.matmul %63, %65, %cst_83 {dimension_numbers = #tpu.dot_dimension_numbers<[1], [0], [0], [1], [0, 0, 1, 1], [], []>} : vector<64x128xbf16>, vector<128x128xbf16>, vector<64x128xf32> -> vector<64x128xf32>
    %67 = arith.addf %61, %66 : vector<64x128xf32>
    %c0_84 = arith.constant 0 : index
    %c2_85 = arith.constant 2 : index
    %c2_86 = arith.constant 2 : index
    %c0_87 = arith.constant 0 : index
    %68 = vector.load %arg7[%c0_84, %c2_85, %c2_86, %c0_87] : memref<1x10x16x128xbf16, #tpu.memory_space<vmem>>, vector<1x8x8x128xbf16>
    %69 = vector.shape_cast %68 : vector<1x8x8x128xbf16> to vector<64x128xbf16>
    %c8 = arith.constant 8 : index
    %c0_88 = arith.constant 0 : index
    %c0_89 = arith.constant 0 : index
    %70 = vector.load %arg4[%c8, %c0_88, %c0_89] : memref<9x128x128xbf16, #tpu.memory_space<vmem>>, vector<1x128x128xbf16>
    %71 = vector.shape_cast %70 : vector<1x128x128xbf16> to vector<128x128xbf16>
    %cst_90 = arith.constant dense<0.000000e+00> : vector<64x128xf32>
    %72 = tpu.matmul %69, %71, %cst_90 {dimension_numbers = #tpu.dot_dimension_numbers<[1], [0], [0], [1], [0, 0, 1, 1], [], []>} : vector<64x128xbf16>, vector<128x128xbf16>, vector<64x128xf32> -> vector<64x128xf32>
    %73 = arith.addf %67, %72 : vector<64x128xf32>
    %74 = arith.truncf %73 : vector<64x128xf32> to vector<64x128xbf16>
    %c0_91 = arith.constant 0 : index
    %c0_92 = arith.constant 0 : index
    %75 = vector.load %arg5[%c0_91, %c0_92] : memref<64x128xbf16, #tpu.memory_space<vmem>>, vector<64x128xbf16>
    tpu.vector_store %arg5[%c0_91, %c0_92], %74 {strides = array<i32>} : memref<64x128xbf16, #tpu.memory_space<vmem>>, vector<64x128xbf16>,
    %cst_93 = arith.constant dense<0.000000e+00> : vector<128xf32>
    %76 = vector.multi_reduction <add>, %73, %cst_93 [0] : vector<64x128xf32> to vector<128xf32>
    %77 = vector.shape_cast %76 : vector<128xf32> to vector<1x128xf32>
    %78 = arith.mulf %73, %73 : vector<64x128xf32>
    %cst_94 = arith.constant dense<0.000000e+00> : vector<128xf32>
    %79 = vector.multi_reduction <add>, %78, %cst_94 [0] : vector<64x128xf32> to vector<128xf32>
    %80 = vector.shape_cast %79 : vector<128xf32> to vector<1x128xf32>
    %81 = tpu.concatenate %77, %80 in 0 : vector<1x128xf32>, vector<1x128xf32> -> vector<2x128xf32>
    %82 = vector.shape_cast %81 : vector<2x128xf32> to vector<1x2x128xf32>
    %c0_95 = arith.constant 0 : index
    %c0_96 = arith.constant 0 : index
    %c0_97 = arith.constant 0 : index
    %83 = vector.load %arg6[%c0_95, %c0_96, %c0_97] : memref<1x2x128xf32, #tpu.memory_space<vmem>>, vector<1x2x128xf32>
    tpu.vector_store %arg6[%c0_95, %c0_96, %c0_97], %82 {strides = array<i32>} : memref<1x2x128xf32, #tpu.memory_space<vmem>>, vector<1x2x128xf32>,
    return
  }
  func.func @transform_0(%arg0: i32) -> (i32, i32) {
    %c0_i32 = arith.constant 0 : i32
    %c0_i32_0 = arith.constant 0 : i32
    return %arg0, %c0_i32 : i32, i32
  }
  func.func @transform_1(%arg0: i32) -> (i32, i32) {
    %c0_i32 = arith.constant 0 : i32
    %c0_i32_0 = arith.constant 0 : i32
    %c0_i32_1 = arith.constant 0 : i32
    return %c0_i32, %c0_i32_0 : i32, i32
  }
  func.func @transform_2(%arg0: i32) -> (i32, i32) {
    %c0_i32 = arith.constant 0 : i32
    %c0_i32_0 = arith.constant 0 : i32
    %c0_i32_1 = arith.constant 0 : i32
    return %c0_i32, %c0_i32_0 : i32, i32
  }
  func.func @transform_3(%arg0: i32) -> (i32, i32, i32) {
    %c0_i32 = arith.constant 0 : i32
    %c0_i32_0 = arith.constant 0 : i32
    %c0_i32_1 = arith.constant 0 : i32
    %c0_i32_2 = arith.constant 0 : i32
    return %c0_i32, %c0_i32_0, %c0_i32_1 : i32, i32, i32
  }
  func.func @transform_4(%arg0: i32) -> (i32, i32) {
    %c0_i32 = arith.constant 0 : i32
    %c0_i32_0 = arith.constant 0 : i32
    return %arg0, %c0_i32 : i32, i32
  }
  func.func @transform_5(%arg0: i32) -> (i32, i32, i32) {
    %c0_i32 = arith.constant 0 : i32
    %c0_i32_0 = arith.constant 0 : i32
    %c0_i32_1 = arith.constant 0 : i32
    return %arg0, %c0_i32, %c0_i32_0 : i32, i32, i32
  }
}

module attributes {stable_mosaic.version = 11 : i64} {
  func.func @stats3_kernel(%arg0: i32, %arg1: memref<64x128xbf16, #tpu.memory_space<vmem>>, %arg2: memref<1x128xf32, #tpu.memory_space<vmem>>, %arg3: memref<1x128xf32, #tpu.memory_space<vmem>>, %arg4: memref<128x128xbf16, #tpu.memory_space<vmem>>, %arg5: memref<1x2x128xf32, #tpu.memory_space<vmem>>) attributes {dimension_semantics = [#tpu.dimension_semantics<parallel>], iteration_bounds = array<i64: 2>, scalar_prefetch = 0 : i64, scratch_operands = 0 : i64, tpu.core_type = #tpu.core_type<tc>, window_params = [{transform_indices = @transform_0, window_bounds = array<i64: 64, 128>}, {pipeline_mode = #tpu.pipeline_mode<synchronous>, transform_indices = @transform_1, window_bounds = array<i64: 1, 128>}, {pipeline_mode = #tpu.pipeline_mode<synchronous>, transform_indices = @transform_2, window_bounds = array<i64: 1, 128>}, {pipeline_mode = #tpu.pipeline_mode<synchronous>, transform_indices = @transform_3, window_bounds = array<i64: 128, 128>}, {transform_indices = @transform_4, window_bounds = array<i64: 1, 2, 128>}]} {
    %c0 = arith.constant 0 : index
    %c0_0 = arith.constant 0 : index
    %0 = vector.load %arg1[%c0, %c0_0] : memref<64x128xbf16, #tpu.memory_space<vmem>>, vector<64x128xbf16>
    %c0_1 = arith.constant 0 : index
    %c0_2 = arith.constant 0 : index
    %1 = vector.load %arg2[%c0_1, %c0_2] : memref<1x128xf32, #tpu.memory_space<vmem>>, vector<1x128xf32>
    %c0_3 = arith.constant 0 : index
    %c0_4 = arith.constant 0 : index
    %2 = vector.load %arg3[%c0_3, %c0_4] : memref<1x128xf32, #tpu.memory_space<vmem>>, vector<1x128xf32>
    %c0_5 = arith.constant 0 : index
    %c0_6 = arith.constant 0 : index
    %3 = vector.load %arg4[%c0_5, %c0_6] : memref<128x128xbf16, #tpu.memory_space<vmem>>, vector<128x128xbf16>
    %4 = arith.extf %0 : vector<64x128xbf16> to vector<64x128xf32>
    %5 = vector.broadcast %1 : vector<1x128xf32> to vector<64x128xf32>
    %6 = arith.mulf %4, %5 : vector<64x128xf32>
    %7 = vector.broadcast %2 : vector<1x128xf32> to vector<64x128xf32>
    %8 = arith.addf %6, %7 : vector<64x128xf32>
    %cst = arith.constant 0.000000e+00 : f32
    %9 = vector.broadcast %cst : f32 to vector<64x128xf32>
    %10 = arith.maximumf %8, %9 : vector<64x128xf32>
    %11 = arith.truncf %10 : vector<64x128xf32> to vector<64x128xbf16>
    %cst_7 = arith.constant dense<0.000000e+00> : vector<64x128xf32>
    %12 = tpu.matmul %11, %3, %cst_7 {dimension_numbers = #tpu.dot_dimension_numbers<[1], [0], [0], [1], [0, 0, 1, 1], [], []>} : vector<64x128xbf16>, vector<128x128xbf16>, vector<64x128xf32> -> vector<64x128xf32>
    %cst_8 = arith.constant dense<0.000000e+00> : vector<128xf32>
    %13 = vector.multi_reduction <add>, %12, %cst_8 [0] : vector<64x128xf32> to vector<128xf32>
    %14 = vector.shape_cast %13 : vector<128xf32> to vector<1x128xf32>
    %15 = arith.mulf %12, %12 : vector<64x128xf32>
    %cst_9 = arith.constant dense<0.000000e+00> : vector<128xf32>
    %16 = vector.multi_reduction <add>, %15, %cst_9 [0] : vector<64x128xf32> to vector<128xf32>
    %17 = vector.shape_cast %16 : vector<128xf32> to vector<1x128xf32>
    %18 = tpu.concatenate %14, %17 in 0 : vector<1x128xf32>, vector<1x128xf32> -> vector<2x128xf32>
    %19 = vector.shape_cast %18 : vector<2x128xf32> to vector<1x2x128xf32>
    %c0_10 = arith.constant 0 : index
    %c0_11 = arith.constant 0 : index
    %c0_12 = arith.constant 0 : index
    %20 = vector.load %arg5[%c0_10, %c0_11, %c0_12] : memref<1x2x128xf32, #tpu.memory_space<vmem>>, vector<1x2x128xf32>
    tpu.vector_store %arg5[%c0_10, %c0_11, %c0_12], %19 {strides = array<i32>} : memref<1x2x128xf32, #tpu.memory_space<vmem>>, vector<1x2x128xf32>,
    return
  }
  func.func @transform_0(%arg0: i32) -> (i32, i32) {
    %c0_i32 = arith.constant 0 : i32
    %c0_i32_0 = arith.constant 0 : i32
    return %arg0, %c0_i32 : i32, i32
  }
  func.func @transform_1(%arg0: i32) -> (i32, i32) {
    %c0_i32 = arith.constant 0 : i32
    %c0_i32_0 = arith.constant 0 : i32
    %c0_i32_1 = arith.constant 0 : i32
    return %c0_i32, %c0_i32_0 : i32, i32
  }
  func.func @transform_2(%arg0: i32) -> (i32, i32) {
    %c0_i32 = arith.constant 0 : i32
    %c0_i32_0 = arith.constant 0 : i32
    %c0_i32_1 = arith.constant 0 : i32
    return %c0_i32, %c0_i32_0 : i32, i32
  }
  func.func @transform_3(%arg0: i32) -> (i32, i32) {
    %c0_i32 = arith.constant 0 : i32
    %c0_i32_0 = arith.constant 0 : i32
    %c0_i32_1 = arith.constant 0 : i32
    return %c0_i32, %c0_i32_0 : i32, i32
  }
  func.func @transform_4(%arg0: i32) -> (i32, i32, i32) {
    %c0_i32 = arith.constant 0 : i32
    %c0_i32_0 = arith.constant 0 : i32
    %c0_i32_1 = arith.constant 0 : i32
    return %arg0, %c0_i32, %c0_i32_0 : i32, i32, i32
  }
}

module attributes {stable_mosaic.version = 11 : i64} {
  func.func @final_kernel(%arg0: i32, %arg1: memref<64x128xbf16, #tpu.memory_space<vmem>>, %arg2: memref<64x128xbf16, #tpu.memory_space<vmem>>, %arg3: memref<1x128xf32, #tpu.memory_space<vmem>>, %arg4: memref<1x128xf32, #tpu.memory_space<vmem>>, %arg5: memref<128x128xbf16, #tpu.memory_space<vmem>>, %arg6: memref<1x128xf32, #tpu.memory_space<vmem>>, %arg7: memref<1x128xf32, #tpu.memory_space<vmem>>, %arg8: memref<64x128xf32, #tpu.memory_space<vmem>>) attributes {dimension_semantics = [#tpu.dimension_semantics<parallel>], iteration_bounds = array<i64: 2>, scalar_prefetch = 0 : i64, scratch_operands = 0 : i64, tpu.core_type = #tpu.core_type<tc>, window_params = [{transform_indices = @transform_0, window_bounds = array<i64: 64, 128>}, {transform_indices = @transform_1, window_bounds = array<i64: 64, 128>}, {pipeline_mode = #tpu.pipeline_mode<synchronous>, transform_indices = @transform_2, window_bounds = array<i64: 1, 128>}, {pipeline_mode = #tpu.pipeline_mode<synchronous>, transform_indices = @transform_3, window_bounds = array<i64: 1, 128>}, {pipeline_mode = #tpu.pipeline_mode<synchronous>, transform_indices = @transform_4, window_bounds = array<i64: 128, 128>}, {pipeline_mode = #tpu.pipeline_mode<synchronous>, transform_indices = @transform_5, window_bounds = array<i64: 1, 128>}, {pipeline_mode = #tpu.pipeline_mode<synchronous>, transform_indices = @transform_6, window_bounds = array<i64: 1, 128>}, {transform_indices = @transform_7, window_bounds = array<i64: 64, 128>}]} {
    %c0 = arith.constant 0 : index
    %c0_0 = arith.constant 0 : index
    %0 = vector.load %arg1[%c0, %c0_0] : memref<64x128xbf16, #tpu.memory_space<vmem>>, vector<64x128xbf16>
    %c0_1 = arith.constant 0 : index
    %c0_2 = arith.constant 0 : index
    %1 = vector.load %arg3[%c0_1, %c0_2] : memref<1x128xf32, #tpu.memory_space<vmem>>, vector<1x128xf32>
    %c0_3 = arith.constant 0 : index
    %c0_4 = arith.constant 0 : index
    %2 = vector.load %arg4[%c0_3, %c0_4] : memref<1x128xf32, #tpu.memory_space<vmem>>, vector<1x128xf32>
    %c0_5 = arith.constant 0 : index
    %c0_6 = arith.constant 0 : index
    %3 = vector.load %arg5[%c0_5, %c0_6] : memref<128x128xbf16, #tpu.memory_space<vmem>>, vector<128x128xbf16>
    %4 = arith.extf %0 : vector<64x128xbf16> to vector<64x128xf32>
    %5 = vector.broadcast %1 : vector<1x128xf32> to vector<64x128xf32>
    %6 = arith.mulf %4, %5 : vector<64x128xf32>
    %7 = vector.broadcast %2 : vector<1x128xf32> to vector<64x128xf32>
    %8 = arith.addf %6, %7 : vector<64x128xf32>
    %cst = arith.constant 0.000000e+00 : f32
    %9 = vector.broadcast %cst : f32 to vector<64x128xf32>
    %10 = arith.maximumf %8, %9 : vector<64x128xf32>
    %11 = arith.truncf %10 : vector<64x128xf32> to vector<64x128xbf16>
    %cst_7 = arith.constant dense<0.000000e+00> : vector<64x128xf32>
    %12 = tpu.matmul %11, %3, %cst_7 {dimension_numbers = #tpu.dot_dimension_numbers<[1], [0], [0], [1], [0, 0, 1, 1], [], []>} : vector<64x128xbf16>, vector<128x128xbf16>, vector<64x128xf32> -> vector<64x128xf32>
    %c0_8 = arith.constant 0 : index
    %c0_9 = arith.constant 0 : index
    %13 = vector.load %arg6[%c0_8, %c0_9] : memref<1x128xf32, #tpu.memory_space<vmem>>, vector<1x128xf32>
    %14 = vector.broadcast %13 : vector<1x128xf32> to vector<64x128xf32>
    %15 = arith.mulf %12, %14 : vector<64x128xf32>
    %c0_10 = arith.constant 0 : index
    %c0_11 = arith.constant 0 : index
    %16 = vector.load %arg7[%c0_10, %c0_11] : memref<1x128xf32, #tpu.memory_space<vmem>>, vector<1x128xf32>
    %17 = vector.broadcast %16 : vector<1x128xf32> to vector<64x128xf32>
    %18 = arith.addf %15, %17 : vector<64x128xf32>
    %c0_12 = arith.constant 0 : index
    %c0_13 = arith.constant 0 : index
    %19 = vector.load %arg2[%c0_12, %c0_13] : memref<64x128xbf16, #tpu.memory_space<vmem>>, vector<64x128xbf16>
    %20 = arith.extf %19 : vector<64x128xbf16> to vector<64x128xf32>
    %21 = arith.addf %18, %20 : vector<64x128xf32>
    %cst_14 = arith.constant 0.000000e+00 : f32
    %22 = vector.broadcast %cst_14 : f32 to vector<64x128xf32>
    %23 = arith.maximumf %21, %22 : vector<64x128xf32>
    %c0_15 = arith.constant 0 : index
    %c0_16 = arith.constant 0 : index
    %24 = vector.load %arg8[%c0_15, %c0_16] : memref<64x128xf32, #tpu.memory_space<vmem>>, vector<64x128xf32>
    tpu.vector_store %arg8[%c0_15, %c0_16], %23 {strides = array<i32>} : memref<64x128xf32, #tpu.memory_space<vmem>>, vector<64x128xf32>,
    return
  }
  func.func @transform_0(%arg0: i32) -> (i32, i32) {
    %c0_i32 = arith.constant 0 : i32
    %c0_i32_0 = arith.constant 0 : i32
    return %arg0, %c0_i32 : i32, i32
  }
  func.func @transform_1(%arg0: i32) -> (i32, i32) {
    %c0_i32 = arith.constant 0 : i32
    %c0_i32_0 = arith.constant 0 : i32
    return %arg0, %c0_i32 : i32, i32
  }
  func.func @transform_2(%arg0: i32) -> (i32, i32) {
    %c0_i32 = arith.constant 0 : i32
    %c0_i32_0 = arith.constant 0 : i32
    %c0_i32_1 = arith.constant 0 : i32
    return %c0_i32, %c0_i32_0 : i32, i32
  }
  func.func @transform_3(%arg0: i32) -> (i32, i32) {
    %c0_i32 = arith.constant 0 : i32
    %c0_i32_0 = arith.constant 0 : i32
    %c0_i32_1 = arith.constant 0 : i32
    return %c0_i32, %c0_i32_0 : i32, i32
  }
  func.func @transform_4(%arg0: i32) -> (i32, i32) {
    %c0_i32 = arith.constant 0 : i32
    %c0_i32_0 = arith.constant 0 : i32
    %c0_i32_1 = arith.constant 0 : i32
    return %c0_i32, %c0_i32_0 : i32, i32
  }
  func.func @transform_5(%arg0: i32) -> (i32, i32) {
    %c0_i32 = arith.constant 0 : i32
    %c0_i32_0 = arith.constant 0 : i32
    %c0_i32_1 = arith.constant 0 : i32
    return %c0_i32, %c0_i32_0 : i32, i32
  }
  func.func @transform_6(%arg0: i32) -> (i32, i32) {
    %c0_i32 = arith.constant 0 : i32
    %c0_i32_0 = arith.constant 0 : i32
    %c0_i32_1 = arith.constant 0 : i32
    return %c0_i32, %c0_i32_0 : i32, i32
  }
  func.func @transform_7(%arg0: i32) -> (i32, i32) {
    %c0_i32 = arith.constant 0 : i32
    %c0_i32_0 = arith.constant 0 : i32
    return %arg0, %c0_i32 : i32, i32
  }
}

</mosaic_0001>

<bundles_post_ra>
// kernel: bottleneck_forward.4
= control target key start
LH: loop header
LB: loop body
LE: loop exit
PB: predicated region body
PF: predicated region fallthrough
CT: control target
= control target key end

     0   :  { %s605_s12 = smov 0   ;;  %s657_s0 = inlined_call_operand.vmem [shape: bf16[128,128], index: 0, kind: input, shape index: {}]   ;;  %s658_s1 = inlined_call_operand.vmem [shape: bf16[128,128], index: 1, kind: input, shape index: {}]   ;;  %s659_s2 = inlined_call_operand.vmem [shape: bf16[128,128], index: 2, kind: output, shape index: {0}]   ;;  %s660_s3 = inlined_call_operand.vmem [shape: f32[2,2,128], index: 3, kind: output, shape index: {1}]  }
   0x1 LB: > { %s611_s13 = sadd.s32 4294967295, %s583_s12   ;;  %p454_p0 = scmp.ge.s32.totalorder %s583_s12, 1  ;;  %s583_s12 = sphi %s605_s12, %s14_s12  }
   0x2   : > { %p141_p1 = scmp.lt.s32.totalorder %s583_s12, 3 }
   0x4   : > { %p142_p2 = pnand %p454_p0, %p141_p1 }
   0x5   : > { %s455_s22 = sshll.u32 (!%p142_p2), %s611_s13, 3  ;;  %p181_p4 = scmp.lt.s32.totalorder (!%p142_p2), %s611_s13, 1 }
   0x6   : > { %145 = sbr.rel (%p142_p2) target bundleno = 207 (0xcf), region = 28  ;;  %p170_p3 = scmp.lt.s32.totalorder (!%p142_p2), %s455_s22, 15 }
   0xb   : > { %v521_v0 = vld [vmem:[%s658_s1 + $0x38] sm:$0xff]  ;;  %v520_v1 = vld [vmem:[%s658_s1 + $0x30] sm:$0xff]  ;;  %v519_v2 = vld [vmem:[%s658_s1 + $0x28] sm:$0xff]  ;;  %s662_s22 = smov (!%p170_p3, %s455_s22), 15  ;;  %s664_s13 = smov (!%p181_p4, %s611_s13), 1  ;;  %vm360_vm0 = vcmask 1040384  }
   0xc   : > { %281 = vmatpush.bf16.msra.mxu0 %v521_v0  ;;  %545 = vmatpush.bf16.msra.mxu1 %v521_v0  ;;  %v518_v3 = vld [vmem:[%s658_s1 + $0x20] sm:$0xff]  ;;  %v517_v4 = vld [vmem:[%s658_s1 + $0x18] sm:$0xff]  ;;  %v516_v5 = vld [vmem:[%s658_s1 + $0x10] sm:$0xff]  ;;  %s456_s29 = sshll.u32 %s662_s22, 2  ;;  %s459_s11 = sshll.u32 %s664_s13, 1 }
   0xd   : > { %546 = vmatpush.bf16.msra.mxu2 %v521_v0  ;;  %547 = vmatpush.bf16.msra.mxu3 %v521_v0  ;;  %v515_v6 = vld [vmem:[%s658_s1 + $0x8] sm:$0xff]  ;;  %v514_v7 = vld [vmem:[%s658_s1] sm:$0xff]  ;;  %s173_s7 = scalar_lea.vmem %s657_s0, %s456_s29  ;;  %s179_s10 = scalar_lea.vmem %s659_s2, %s456_s29 }
   0xe   : > { %v510_v8 = vld [vmem:[%s173_s7] sm:$0xff]  ;;  %v511_v9 = vld [vmem:[%s173_s7 + $0x8] sm:$0xff]  ;;  %v512_v10 = vld [vmem:[%s173_s7 + $0x10] sm:$0xff]  ;;  %s184_s16 = scalar_lea.vmem %s660_s3, %s459_s11 }
   0xf   : > { %v513_v11 = vld [vmem:[%s173_s7 + $0x18] sm:$0xff] }
  0x10   : > { %282 = vmatpush.bf16.msra.mxu0 %v520_v1  ;;  %548 = vmatpush.bf16.msra.mxu1 %v520_v1 }
  0x11   : > { %549 = vmatpush.bf16.msra.mxu2 %v520_v1  ;;  %550 = vmatpush.bf16.msra.mxu3 %v520_v1 }
  0x14   : > { %283 = vmatpush.bf16.msra.mxu0 %v519_v2  ;;  %551 = vmatpush.bf16.msra.mxu1 %v519_v2 }
  0x15   : > { %552 = vmatpush.bf16.msra.mxu2 %v519_v2  ;;  %553 = vmatpush.bf16.msra.mxu3 %v519_v2 }
  0x18   : > { %284 = vmatpush.bf16.msra.mxu0 %v518_v3  ;;  %554 = vmatpush.bf16.msra.mxu1 %v518_v3 }
  0x19   : > { %555 = vmatpush.bf16.msra.mxu2 %v518_v3  ;;  %556 = vmatpush.bf16.msra.mxu3 %v518_v3 }
  0x1c   : > { %285 = vmatpush.bf16.msra.mxu0 %v517_v4  ;;  %557 = vmatpush.bf16.msra.mxu1 %v517_v4 }
  0x1d   : > { %558 = vmatpush.bf16.msra.mxu2 %v517_v4  ;;  %559 = vmatpush.bf16.msra.mxu3 %v517_v4 }
  0x20   : > { %286 = vmatpush.bf16.msra.mxu0 %v516_v5  ;;  %560 = vmatpush.bf16.msra.mxu1 %v516_v5 }
  0x21   : > { %561 = vmatpush.bf16.msra.mxu2 %v516_v5  ;;  %562 = vmatpush.bf16.msra.mxu3 %v516_v5 }
  0x24   : > { %287 = vmatpush.bf16.msra.mxu0 %v515_v6  ;;  %563 = vmatpush.bf16.msra.mxu1 %v515_v6 }
  0x25   : > { %564 = vmatpush.bf16.msra.mxu2 %v515_v6  ;;  %565 = vmatpush.bf16.msra.mxu3 %v515_v6 }
  0x28   : > { %288 = vmatpush.bf16.msra.mxu0 %v514_v7  ;;  %566 = vmatpush.bf16.msra.mxu1 %v514_v7 }
  0x29   : > { %567 = vmatpush.bf16.msra.mxu2 %v514_v7  ;;  %568 = vmatpush.bf16.msra.mxu3 %v514_v7 }
  0x2b   : > { %289 = vmatmul.bf16.vlgmr.msra.gmra.mxu0 %v510_v8  ;;  %294 = vmatmul.bf16.vlgmr.msra.gmra.mxu1 %v511_v9 }
  0x2c   : > { %299 = vmatmul.bf16.vlgmr.msra.gmra.mxu2 %v512_v10  ;;  %304 = vmatmul.bf16.vlgmr.msra.gmra.mxu3 %v513_v11 }
  0xa8   : > { %v290_v12 = vpop.f32.mrf.mxu0  ;;  %v295_v13 = vpop.f32.mrf.mxu1 }
  0xa9   : > { %v339_v16 = vmul.f32 %v290_v12, %v290_v12  ;;  %v341_v23 = vmul.f32 %v295_v13, %v295_v13 }
  0xaf   : > { %v300_v14 = vpop.f32.mrf.mxu2  ;;  %v305_v15 = vpop.f32.mrf.mxu3 }
  0xb0   : > { %v292_v17 = vpop.f32.mrf.mxu0  ;;  %v297_v18 = vpop.f32.mrf.mxu1  ;;  %v343_v29 = vmul.f32 %v300_v14, %v300_v14  ;;  %v345_v39 = vmul.f32 %v305_v15, %v305_v15 }
  0xb1   : > { %v525_v19 = vpack.c.bf16 %v292_v17, %v290_v12  ;;  %v326_v20 = vadd.f32 %v292_v17, %v290_v12  ;;  %v340_v21 = vmul.f32 %v292_v17, %v292_v17  ;;  %v530_v22 = vpack.c.bf16 %v297_v18, %v295_v13 }
  0xb2   : > { %v342_v27 = vmul.f32 %v297_v18, %v297_v18 }
  0xb3   : > { %526 = vst [vmem:[%s179_s10] sm:$0xff] %v525_v19   ;;  %v347_v24 = vadd.f32 %v340_v21, %v339_v16  ;;  %v327_v25 = vadd.f32 %v326_v20, %v295_v13 }
  0xb4   : > { %542 = vst [vmem:[%s179_s10 + $0x8] sm:$0xff] %v530_v22  }
  0xb5   : > { %v328_v26 = vadd.f32 %v327_v25, %v297_v18  ;;  %v348_v28 = vadd.f32 %v347_v24, %v341_v23 }
  0xb7   : > { %v349_v30 = vadd.f32 %v348_v28, %v342_v27  ;;  %v302_v31 = vpop.f32.mrf.mxu2  ;;  %v329_v32 = vadd.f32 %v328_v26, %v300_v14  ;;  %v307_v33 = vpop.f32.mrf.mxu3 }
  0xb8   : > { %v535_v34 = vpack.c.bf16 %v302_v31, %v300_v14  ;;  %v540_v35 = vpack.c.bf16 %v307_v33, %v305_v15  ;;  %v344_v37 = vmul.f32 %v302_v31, %v302_v31  ;;  %v346_v43 = vmul.f32 %v307_v33, %v307_v33 }
  0xb9   : > { %v330_v36 = vadd.f32 %v329_v32, %v302_v31  ;;  %v350_v38 = vadd.f32 %v349_v30, %v343_v29 }
  0xba   : > { %543 = vst [vmem:[%s179_s10 + $0x10] sm:$0xff] %v535_v34  }
  0xbb   : > { %v351_v40 = vadd.f32 %v350_v38, %v344_v37  ;;  %544 = vst [vmem:[%s179_s10 + $0x18] sm:$0xff] %v540_v35   ;;  %v331_v41 = vadd.f32 %v330_v36, %v305_v15 }
  0xbd   : > { %v332_v42 = vadd.f32 %v331_v41, %v307_v33  ;;  %v352_v44 = vadd.f32 %v351_v40, %v345_v39 }
  0xbf   : > { %v333_v45 = vrot.slane %v332_v42, 4  ;;  %v353_v46 = vadd.f32 %v352_v44, %v346_v43 }
  0xc1   : > { %v334_v47 = vadd.f32 %v333_v45, %v332_v42  ;;  %v354_v48 = vrot.slane %v353_v46, 4 }
  0xc3   : > { %v335_v49 = vrot.slane %v334_v47, 2  ;;  %v355_v50 = vadd.f32 %v354_v48, %v353_v46 }
  0xc5   : > { %v336_v51 = vadd.f32 %v335_v49, %v334_v47  ;;  %v356_v52 = vrot.slane %v355_v50, 2 }
  0xc7   : > { %v337_v53 = vrot.slane %v336_v51, 1  ;;  %v357_v54 = vadd.f32 %v356_v52, %v355_v50 }
  0xc9   : > { %v358_v55 = vrot.slane %v357_v54, 1  ;;  %v338_v56 = vadd.f32 %v337_v53, %v336_v51 }
  0xcb   : > { %v359_v57 = vadd.f32 %v358_v55, %v357_v54 }
  0xcd   : > { %v361_v58 = vsel %vm360_vm0, %v338_v56, %v359_v57 }
  0xce   : > { %362 = vst [vmem:[%s184_s16] sm:$0x3] %v361_v58 }
  0xcf PF: > { %s14_s12 = sadd.s32 1, %s583_s12  }
  0xd0   : > { %p11_p5 = scmp.ge.s32.totalorder %s14_s12, 4  }
  0xd2   :  { %13 = sbr.rel (!%p11_p5) target bundleno = 1 (0x1), region = 70 }

// kernel: bottleneck_forward.6
= control target key start
LH: loop header
LB: loop body
LE: loop exit
PB: predicated region body
PF: predicated region fallthrough
CT: control target
= control target key end

     0   :  { %s569_s15 = smov 0   ;;  %s621_s0 = inlined_call_operand.vmem [shape: bf16[128,128], index: 0, kind: input, shape index: {}]   ;;  %s622_s1 = inlined_call_operand.vmem [shape: f32[1,128], index: 1, kind: input, shape index: {}]   ;;  %s623_s2 = inlined_call_operand.vmem [shape: f32[1,128], index: 2, kind: input, shape index: {}]   ;;  %s624_s3 = inlined_call_operand.vmem [shape: bf16[128,128], index: 3, kind: input, shape index: {}]   ;;  %s625_s4 = inlined_call_operand.vmem [shape: f32[2,2,128], index: 4, kind: output, shape index: {}]  }
   0x1 LB: > { %s575_s16 = sadd.s32 4294967295, %s542_s15   ;;  %p437_p0 = scmp.ge.s32.totalorder %s542_s15, 1  ;;  %s542_s15 = sphi %s569_s15, %s14_s15  }
   0x2   : > { %p163_p1 = scmp.lt.s32.totalorder %s542_s15, 3 }
   0x4   : > { %p164_p2 = pnand %p437_p0, %p163_p1 }
   0x5   : > { %s438_s19 = sshll.u32 (!%p164_p2), %s575_s16, 3  ;;  %p194_p4 = scmp.lt.s32.totalorder (!%p164_p2), %s575_s16, 1 }
   0x6   : > { %167 = sbr.rel (%p164_p2) target bundleno = 207 (0xcf), region = 36  ;;  %p189_p3 = scmp.lt.s32.totalorder (!%p164_p2), %s438_s19, 15 }
   0xb   : > { %v482_v0 = vld [vmem:[%s624_s3 + $0x38] sm:$0xff]  ;;  %v481_v1 = vld [vmem:[%s624_s3 + $0x30] sm:$0xff]  ;;  %s627_s19 = smov (!%p189_p3, %s438_s19), 15  ;;  %v480_v2 = vld [vmem:[%s624_s3 + $0x28] sm:$0xff]  ;;  %s629_s16 = smov (!%p194_p4, %s575_s16), 1  ;;  %vm377_vm0 = vcmask 1040384  }
   0xc   : > { %314 = vmatpush.bf16.msra.mxu0 %v482_v0  ;;  %502 = vmatpush.bf16.msra.mxu1 %v482_v0  ;;  %s439_s22 = sshll.u32 %s627_s19, 2  ;;  %v479_v4 = vld [vmem:[%s624_s3 + $0x20] sm:$0xff]  ;;  %v478_v14 = vld [vmem:[%s624_s3 + $0x18] sm:$0xff]  ;;  %v477_v24 = vld [vmem:[%s624_s3 + $0x10] sm:$0xff]  ;;  %s440_s18 = sshll.u32 %s629_s16, 1 }
   0xd   : > { %503 = vmatpush.bf16.msra.mxu2 %v482_v0  ;;  %504 = vmatpush.bf16.msra.mxu3 %v482_v0  ;;  %s192_s27 = scalar_lea.vmem %s621_s0, %s439_s22  ;;  %v534_v9 = vld [vmem:[%s622_s1] ss:$0 sm:$0xff]  ;;  %v476_v33 = vld [vmem:[%s624_s3 + $0x8] sm:$0xff]  ;;  %s197_s21 = scalar_lea.vmem %s625_s4, %s440_s18 }
   0xe   : > { %v484_v3 = vld [vmem:[%s192_s27] sm:$0xff]   ;;  %v499_v5 = vld [vmem:[%s192_s27 + $0x8] sm:$0xff]   ;;  %v500_v6 = vld [vmem:[%s192_s27 + $0x10] sm:$0xff]  }
   0xf   : > { %v501_v7 = vld [vmem:[%s192_s27 + $0x18] sm:$0xff]   ;;  %v485_v8 = vunpack.c.l.bf16 %v484_v3  ;;  %v486_v10 = vunpack.c.h.bf16 %v484_v3  ;;  %v489_v11 = vunpack.c.l.bf16 %v499_v5  ;;  %v490_v12 = vunpack.c.h.bf16 %v499_v5  ;;  %v535_v19 = vld [vmem:[%s623_s2] ss:$0 sm:$0xff] }
  0x10   : > { %315 = vmatpush.bf16.msra.mxu0 %v481_v1  ;;  %505 = vmatpush.bf16.msra.mxu1 %v481_v1  ;;  %v493_v13 = vunpack.c.l.bf16 %v500_v6  ;;  %v494_v15 = vunpack.c.h.bf16 %v500_v6  ;;  %v497_v16 = vunpack.c.l.bf16 %v501_v7  ;;  %v498_v17 = vunpack.c.h.bf16 %v501_v7  ;;  %v475_v41 = vld [vmem:[%s624_s3] sm:$0xff] }
  0x11   : > { %506 = vmatpush.bf16.msra.mxu2 %v481_v1  ;;  %507 = vmatpush.bf16.msra.mxu3 %v481_v1  ;;  %v235_v18 = vmul.f32 %v534_v9, %v485_v8  ;;  %v236_v20 = vmul.f32 %v534_v9, %v486_v10  ;;  %v237_v21 = vmul.f32 %v534_v9, %v489_v11 }
  0x12   : > { %v238_v22 = vmul.f32 %v534_v9, %v490_v12  ;;  %v239_v23 = vmul.f32 %v534_v9, %v493_v13  ;;  %v240_v25 = vmul.f32 %v534_v9, %v494_v15  ;;  %v241_v26 = vmul.f32 %v534_v9, %v497_v16 }
  0x13   : > { %v242_v27 = vmul.f32 %v534_v9, %v498_v17  ;;  %v246_v28 = vadd.f32 %v535_v19, %v235_v18  ;;  %v247_v29 = vadd.f32 %v535_v19, %v236_v20  ;;  %v248_v30 = vadd.f32 %v535_v19, %v237_v21 }
  0x14   : > { %316 = vmatpush.bf16.msra.mxu0 %v480_v2  ;;  %508 = vmatpush.bf16.msra.mxu1 %v480_v2  ;;  %v249_v31 = vadd.f32 %v535_v19, %v238_v22  ;;  %v250_v32 = vadd.f32 %v535_v19, %v239_v23  ;;  %v251_v34 = vadd.f32 %v535_v19, %v240_v25 }
  0x15   : > { %509 = vmatpush.bf16.msra.mxu2 %v480_v2  ;;  %510 = vmatpush.bf16.msra.mxu3 %v480_v2  ;;  %v252_v35 = vadd.f32 %v535_v19, %v241_v26  ;;  %v253_v36 = vadd.f32 %v535_v19, %v242_v27  ;;  %v254_v37 = vmax.f32 %v246_v28, 0.0  ;;  %v255_v38 = vmax.f32 %v247_v29, 0.0 }
  0x16   : > { %v256_v39 = vmax.f32 %v248_v30, 0.0  ;;  %v257_v40 = vmax.f32 %v249_v31, 0.0  ;;  %v258_v42 = vmax.f32 %v250_v32, 0.0  ;;  %v259_v43 = vmax.f32 %v251_v34, 0.0 }
  0x17   : > { %v260_v44 = vmax.f32 %v252_v35, 0.0  ;;  %v261_v45 = vmax.f32 %v253_v36, 0.0  ;;  %v262_v46 = vpack.c.bf16 %v255_v38, %v254_v37 }
  0x18   : > { %317 = vmatpush.bf16.msra.mxu0 %v479_v4  ;;  %511 = vmatpush.bf16.msra.mxu1 %v479_v4  ;;  %v263_v47 = vpack.c.bf16 %v257_v40, %v256_v39  ;;  %v264_v48 = vpack.c.bf16 %v259_v43, %v258_v42 }
  0x19   : > { %512 = vmatpush.bf16.msra.mxu2 %v479_v4  ;;  %513 = vmatpush.bf16.msra.mxu3 %v479_v4  ;;  %v265_v49 = vpack.c.bf16 %v261_v45, %v260_v44 }
  0x1c   : > { %318 = vmatpush.bf16.msra.mxu0 %v478_v14  ;;  %514 = vmatpush.bf16.msra.mxu1 %v478_v14 }
  0x1d   : > { %515 = vmatpush.bf16.msra.mxu2 %v478_v14  ;;  %516 = vmatpush.bf16.msra.mxu3 %v478_v14 }
  0x20   : > { %319 = vmatpush.bf16.msra.mxu0 %v477_v24  ;;  %517 = vmatpush.bf16.msra.mxu1 %v477_v24 }
  0x21   : > { %518 = vmatpush.bf16.msra.mxu2 %v477_v24  ;;  %519 = vmatpush.bf16.msra.mxu3 %v477_v24 }
  0x24   : > { %320 = vmatpush.bf16.msra.mxu0 %v476_v33  ;;  %520 = vmatpush.bf16.msra.mxu1 %v476_v33 }
  0x25   : > { %521 = vmatpush.bf16.msra.mxu2 %v476_v33  ;;  %522 = vmatpush.bf16.msra.mxu3 %v476_v33 }
  0x28   : > { %321 = vmatpush.bf16.msra.mxu0 %v475_v41  ;;  %523 = vmatpush.bf16.msra.mxu1 %v475_v41 }
  0x29   : > { %524 = vmatpush.bf16.msra.mxu2 %v475_v41  ;;  %525 = vmatpush.bf16.msra.mxu3 %v475_v41 }
  0x2b   : > { %322 = vmatmul.bf16.vlgmr.msra.gmra.mxu0 %v262_v46  ;;  %327 = vmatmul.bf16.vlgmr.msra.gmra.mxu1 %v263_v47 }
  0x2c   : > { %332 = vmatmul.bf16.vlgmr.msra.gmra.mxu2 %v264_v48  ;;  %337 = vmatmul.bf16.vlgmr.msra.gmra.mxu3 %v265_v49 }
  0xa8   : > { %v323_v50 = vpop.f32.mrf.mxu0  ;;  %v328_v51 = vpop.f32.mrf.mxu1 }
  0xa9   : > { %v356_v55 = vmul.f32 %v323_v50, %v323_v50  ;;  %v358_v59 = vmul.f32 %v328_v51, %v328_v51 }
  0xaf   : > { %v333_v52 = vpop.f32.mrf.mxu2  ;;  %v338_v53 = vpop.f32.mrf.mxu3 }
  0xb0   : > { %v325_v54 = vpop.f32.mrf.mxu0  ;;  %v330_v58 = vpop.f32.mrf.mxu1  ;;  %v360_v1 = vmul.f32 %v333_v52, %v333_v52  ;;  %v362_v9 = vmul.f32 %v338_v53, %v338_v53 }
  0xb1   : > { %v343_v56 = vadd.f32 %v325_v54, %v323_v50  ;;  %v357_v57 = vmul.f32 %v325_v54, %v325_v54  ;;  %v359_v63 = vmul.f32 %v330_v58, %v330_v58 }
  0xb3   : > { %v364_v60 = vadd.f32 %v357_v57, %v356_v55  ;;  %v344_v61 = vadd.f32 %v343_v56, %v328_v51 }
  0xb5   : > { %v345_v62 = vadd.f32 %v344_v61, %v330_v58  ;;  %v365_v0 = vadd.f32 %v364_v60, %v358_v59 }
  0xb7   : > { %v366_v2 = vadd.f32 %v365_v0, %v359_v63  ;;  %v335_v3 = vpop.f32.mrf.mxu2  ;;  %v346_v4 = vadd.f32 %v345_v62, %v333_v52  ;;  %v340_v8 = vpop.f32.mrf.mxu3 }
  0xb8   : > { %v361_v6 = vmul.f32 %v335_v3, %v335_v3  ;;  %v363_v13 = vmul.f32 %v340_v8, %v340_v8 }
  0xb9   : > { %v347_v5 = vadd.f32 %v346_v4, %v335_v3  ;;  %v367_v7 = vadd.f32 %v366_v2, %v360_v1 }
  0xbb   : > { %v368_v10 = vadd.f32 %v367_v7, %v361_v6  ;;  %v348_v11 = vadd.f32 %v347_v5, %v338_v53 }
  0xbd   : > { %v349_v12 = vadd.f32 %v348_v11, %v340_v8  ;;  %v369_v14 = vadd.f32 %v368_v10, %v362_v9 }
  0xbf   : > { %v350_v15 = vrot.slane %v349_v12, 4  ;;  %v370_v16 = vadd.f32 %v369_v14, %v363_v13 }
  0xc1   : > { %v351_v17 = vadd.f32 %v350_v15, %v349_v12  ;;  %v371_v18 = vrot.slane %v370_v16, 4 }
  0xc3   : > { %v352_v19 = vrot.slane %v351_v17, 2  ;;  %v372_v20 = vadd.f32 %v371_v18, %v370_v16 }
  0xc5   : > { %v353_v21 = vadd.f32 %v352_v19, %v351_v17  ;;  %v373_v22 = vrot.slane %v372_v20, 2 }
  0xc7   : > { %v354_v23 = vrot.slane %v353_v21, 1  ;;  %v374_v24 = vadd.f32 %v373_v22, %v372_v20 }
  0xc9   : > { %v375_v25 = vrot.slane %v374_v24, 1  ;;  %v355_v26 = vadd.f32 %v354_v23, %v353_v21 }
  0xcb   : > { %v376_v27 = vadd.f32 %v375_v25, %v374_v24 }
  0xcd   : > { %v378_v28 = vsel %vm377_vm0, %v355_v26, %v376_v27 }
  0xce   : > { %379 = vst [vmem:[%s197_s21] sm:$0x3] %v378_v28 }
  0xcf PF: > { %s14_s15 = sadd.s32 1, %s542_s15  }
  0xd0   : > { %p11_p5 = scmp.ge.s32.totalorder %s14_s15, 4  }
  0xd2   :  { %13 = sbr.rel (!%p11_p5) target bundleno = 1 (0x1), region = 66 }

// kernel: bottleneck_forward.7
= control target key start
LH: loop header
LB: loop body
LE: loop exit
PB: predicated region body
PF: predicated region fallthrough
CT: control target
= control target key end

     0   :  { %12 = vsyncpa [#allocation3], 0  ;;  %s1014_s0 = inlined_call_operand.vmem [shape: bf16[128,128], index: 0, kind: input, shape index: {}]   ;;  %s1015_s1 = inlined_call_operand.vmem [shape: bf16[128,128], index: 1, kind: input, shape index: {}]   ;;  %s1016_s2 = inlined_call_operand.vmem [shape: f32[1,128], index: 2, kind: input, shape index: {}]   ;;  %s1017_s3 = inlined_call_operand.vmem [shape: f32[1,128], index: 3, kind: input, shape index: {}]   ;;  %s1018_s4 = inlined_call_operand.vmem [shape: bf16[128,128], index: 4, kind: input, shape index: {}]   ;;  %s1019_s5 = inlined_call_operand.vmem [shape: f32[1,128], index: 5, kind: input, shape index: {}]   ;;  %s1020_s6 = inlined_call_operand.vmem [shape: f32[1,128], index: 6, kind: input, shape index: {}]   ;;  %s1021_s7 = inlined_call_operand.hbm [shape: f32[128,128], index: 7, kind: output, shape index: {}]  }
   0x1   :  { %14 = vsyncpa [#allocation3 + $0x1], 0  ;;  %s869_s24 = smov 0   ;;  %s871_s25 = smov 0  }
   0x2   :  { %s873_s26 = smov 0   ;;  %s875_s27 = smov 0  }
   0x3 LB: > { %s890_s28 = sadd.s32 4294967295, %s825_s27   ;;  %s601_s29 = sadd.s32 4294967294, %s825_s27   ;;  %s825_s27 = sphi %s875_s27, %s1027_s27   ;;  %s821_s26 = sphi %s873_s26, %s1026_s26   ;;  %s817_s25 = sphi %s871_s25, %s1025_s25   ;;  %s813_s24 = sphi %s869_s24, %s1024_s24  }
   0x4   : > { %s894_s30 = sadd.s32 1, %s825_s27   ;;  %s184_s8 = sadd.s32 1, %s821_s26 }
   0x5   : > { %s181_s9 = ssub.s32 %s825_s27, %s894_s30  ;;  %p194_p0 = scmp.ne.s32.totalorder %s821_s26, %s817_s25 }
   0x6   : > { %p182_p1 = scmp.eq.s32.totalorder %s181_s9, 0  ;;  %p195_p2 = scmp.eq.s32.totalorder %s890_s28, 1 }
   0x7   : > { %p200_p3 = scmp.ne.s32.totalorder %s817_s25, %s813_s24  ;;  %p201_p4 = scmp.eq.s32.totalorder %s601_s29, 1 }
   0x8   : > { %s905_s10 = scalar_select %p182_p1, %s821_s26, %s184_s8  }
   0x9   : > { %p907_p5 = por %p195_p2, %p194_p0  ;;  %p911_p6 = por %p201_p4, %p200_p3 }
   0xa   : > { %p604_p7 = scmp.ge.s32.totalorder %s825_s27, 1  ;;  %p252_p8 = scmp.lt.s32.totalorder %s825_s27, 3 }
   0xc   : > { %p253_p9 = pnand %p604_p7, %p252_p8 }
   0xd   : > { %s606_s15 = sshll.u32 (!%p253_p9), %s890_s28, 3  ;;  %s286_s21 = sand.u32 (!%p253_p9), 1, %s817_s25  }
   0xe   : > { %256 = sbr.rel (%p253_p9) target bundleno = 205 (0xcd), region = 48  ;;  %p290_p10 = scmp.lt.s32.totalorder (!%p253_p9), %s606_s15, 15 }
   0xf   : > { %s655_s22 = sshll.u32 (!%p253_p9), %s890_s28, 6  ;;  %s512_s13 = scalar_lea.sflag (!%p253_p9), [#allocation3], %s286_s21 }
  0x10   : > { %s523_s8 = scalar_lea.hbm (!%p253_p9), %s1021_s7, %s655_s22  ;;  %s783_s20 = scalar_lea.hbm (!%p253_p9), %s1021_s7, 128 }
  0x11   : > { %s526_s9 = sshll.u32 (!%p253_p9), %s523_s8, 4  ;;  %s527_s9 = int_to_ptr.hbm [resolvable:$true] %s526_s9 }
  0x13   : > { %v654_v0 = vld [vmem:[%s1018_s4 + $0x38] sm:$0xff]  ;;  %v653_v1 = vld [vmem:[%s1018_s4 + $0x30] sm:$0xff]  ;;  %s1029_s15 = smov (!%p290_p10, %s606_s15), 15  ;;  %v652_v2 = vld [vmem:[%s1018_s4 + $0x28] sm:$0xff] }
  0x14   : > { %418 = vmatpush.bf16.msra.mxu0 %v654_v0  ;;  %694 = vmatpush.bf16.msra.mxu1 %v654_v0  ;;  %s607_s18 = sshll.u32 %s1029_s15, 2  ;;  %v651_v4 = vld [vmem:[%s1018_s4 + $0x20] sm:$0xff]  ;;  %v650_v14 = vld [vmem:[%s1018_s4 + $0x18] sm:$0xff]  ;;  %v649_v24 = vld [vmem:[%s1018_s4 + $0x10] sm:$0xff]  ;;  %s605_s15 = sshll.u32 %s286_s21, 6 }
  0x15   : > { %695 = vmatpush.bf16.msra.mxu2 %v654_v0  ;;  %696 = vmatpush.bf16.msra.mxu3 %v654_v0  ;;  %s293_s23 = scalar_lea.vmem %s1014_s0, %s607_s18  ;;  %v759_v9 = vld [vmem:[%s1016_s2] ss:$0 sm:$0xff]  ;;  %v648_v33 = vld [vmem:[%s1018_s4 + $0x8] sm:$0xff]  ;;  %s299_s14 = scalar_lea.vmem %s1015_s1, %s607_s18 }
  0x16   : > { %v657_v3 = vld [vmem:[%s293_s23] sm:$0xff]   ;;  %v688_v5 = vld [vmem:[%s293_s23 + $0x8] sm:$0xff]   ;;  %v689_v6 = vld [vmem:[%s293_s23 + $0x10] sm:$0xff]   ;;  %s970_s18 = scalar_lea.vmem [#allocation2], %s605_s15 }
  0x17   : > { %v690_v7 = vld [vmem:[%s293_s23 + $0x18] sm:$0xff]   ;;  %v658_v8 = vunpack.c.l.bf16 %v657_v3  ;;  %v659_v10 = vunpack.c.h.bf16 %v657_v3  ;;  %v662_v11 = vunpack.c.l.bf16 %v688_v5  ;;  %v663_v12 = vunpack.c.h.bf16 %v688_v5  ;;  %v760_v19 = vld [vmem:[%s1017_s3] ss:$0 sm:$0xff]  ;;  %v691_v52 = vld [vmem:[%s299_s14 + $0x8] sm:$0xff]   ;;  %s524_s28 = sshll.u32 %s970_s18, 4  ;;  %s525_s28 = int_to_ptr.vmem [resolvable:$true] %s524_s28 }
  0x18   : > { %419 = vmatpush.bf16.msra.mxu0 %v653_v1  ;;  %697 = vmatpush.bf16.msra.mxu1 %v653_v1  ;;  %v666_v13 = vunpack.c.l.bf16 %v689_v6  ;;  %v667_v15 = vunpack.c.h.bf16 %v689_v6  ;;  %v670_v16 = vunpack.c.l.bf16 %v690_v7  ;;  %v671_v17 = vunpack.c.h.bf16 %v690_v7  ;;  %v647_v41 = vld [vmem:[%s1018_s4] sm:$0xff]  ;;  %v692_v0 = vld [vmem:[%s299_s14 + $0x10] sm:$0xff]  }
  0x19   : > { %698 = vmatpush.bf16.msra.mxu2 %v653_v1  ;;  %699 = vmatpush.bf16.msra.mxu3 %v653_v1  ;;  %v339_v18 = vmul.f32 %v759_v9, %v658_v8  ;;  %v340_v20 = vmul.f32 %v759_v9, %v659_v10  ;;  %v341_v21 = vmul.f32 %v759_v9, %v662_v11  ;;  %v761_v50 = vld [vmem:[%s1019_s5] ss:$0 sm:$0xff]  ;;  %v678_v59 = vunpack.c.l.bf16 %v691_v52  ;;  %v693_v1 = vld [vmem:[%s299_s14 + $0x18] sm:$0xff]  }
  0x1a   : > { %v342_v22 = vmul.f32 %v759_v9, %v663_v12  ;;  %v343_v23 = vmul.f32 %v759_v9, %v666_v13  ;;  %v344_v25 = vmul.f32 %v759_v9, %v667_v15  ;;  %v345_v26 = vmul.f32 %v759_v9, %v670_v16  ;;  %v673_v51 = vld [vmem:[%s299_s14] sm:$0xff]   ;;  %s777_s14 = sshra.s32 %s527_s9, 4  ;;  %s778_s14 = int_to_ptr.hbm [resolvable:$true] %s777_s14 }
  0x1b   : > { %v346_v27 = vmul.f32 %v759_v9, %v671_v17  ;;  %v350_v28 = vadd.f32 %v760_v19, %v339_v18  ;;  %v351_v29 = vadd.f32 %v760_v19, %v340_v20  ;;  %v352_v30 = vadd.f32 %v760_v19, %v341_v21  ;;  %v762_v53 = vld [vmem:[%s1020_s6] ss:$0 sm:$0xff]  ;;  %s779_s16 = scalar_lea.hbm %s778_s14, 64  ;;  %p784_p0 = scmp.lt.s32.totalorder %s778_s14, %s1021_s7 }
  0x1c   : > { %420 = vmatpush.bf16.msra.mxu0 %v652_v2  ;;  %700 = vmatpush.bf16.msra.mxu1 %v652_v2  ;;  %v353_v31 = vadd.f32 %v760_v19, %v342_v22  ;;  %v354_v32 = vadd.f32 %v760_v19, %v343_v23  ;;  %v355_v34 = vadd.f32 %v760_v19, %v344_v25  ;;  %v674_v57 = vunpack.c.l.bf16 %v673_v51  ;;  %p780_p11 = scmp.ne.s32.totalorder %s778_s14, %s779_s16  ;;  %p785_p1 = scmp.lt.s32.totalorder %s783_s20, %s779_s16 }
  0x1d   : > { %701 = vmatpush.bf16.msra.mxu2 %v652_v2  ;;  %702 = vmatpush.bf16.msra.mxu3 %v652_v2  ;;  %v356_v35 = vadd.f32 %v760_v19, %v345_v26  ;;  %v357_v36 = vadd.f32 %v760_v19, %v346_v27  ;;  %v358_v37 = vmax.f32 %v350_v28, 0.0  ;;  %v359_v38 = vmax.f32 %v351_v29, 0.0 }
  0x1e   : > { %v360_v39 = vmax.f32 %v352_v30, 0.0  ;;  %v361_v40 = vmax.f32 %v353_v31, 0.0  ;;  %v362_v42 = vmax.f32 %v354_v32, 0.0  ;;  %v363_v43 = vmax.f32 %v355_v34, 0.0  ;;  %p781_p12 = pnand %p780_p11, %p907_p5  ;;  %p786_p2 = por %p785_p1, %p784_p0 }
  0x1f   : > { %v364_v44 = vmax.f32 %v356_v35, 0.0  ;;  %v365_v45 = vmax.f32 %v357_v36, 0.0  ;;  %v366_v46 = vpack.c.bf16 %v359_v38, %v358_v37  ;;  %v682_v7 = vunpack.c.l.bf16 %v692_v0 }
  0x20   : > { %421 = vmatpush.bf16.msra.mxu0 %v651_v4  ;;  %703 = vmatpush.bf16.msra.mxu1 %v651_v4  ;;  %v367_v47 = vpack.c.bf16 %v361_v40, %v360_v39  ;;  %v368_v48 = vpack.c.bf16 %v363_v43, %v362_v42  ;;  %v686_v9 = vunpack.c.l.bf16 %v693_v1  ;;  %v675_v13 = vunpack.c.h.bf16 %v673_v51  ;;  %p782_p13 = pneg %p781_p12 }
  0x21   : > { %704 = vmatpush.bf16.msra.mxu2 %v651_v4  ;;  %705 = vmatpush.bf16.msra.mxu3 %v651_v4  ;;  %v369_v49 = vpack.c.bf16 %v365_v45, %v364_v44  ;;  %v679_v15 = vunpack.c.h.bf16 %v691_v52  ;;  %v683_v31 = vunpack.c.h.bf16 %v692_v0 }
  0x22   : > { %p787_p3 = pnand %p786_p2, %p782_p13 }
  0x24   : > { %422 = vmatpush.bf16.msra.mxu0 %v650_v14  ;;  %706 = vmatpush.bf16.msra.mxu1 %v650_v14 }
  0x25   : > { %707 = vmatpush.bf16.msra.mxu2 %v650_v14  ;;  %708 = vmatpush.bf16.msra.mxu3 %v650_v14 }
  0x28   : > { %423 = vmatpush.bf16.msra.mxu0 %v649_v24  ;;  %709 = vmatpush.bf16.msra.mxu1 %v649_v24 }
  0x29   : > { %710 = vmatpush.bf16.msra.mxu2 %v649_v24  ;;  %711 = vmatpush.bf16.msra.mxu3 %v649_v24 }
  0x2c   : > { %424 = vmatpush.bf16.msra.mxu0 %v648_v33  ;;  %712 = vmatpush.bf16.msra.mxu1 %v648_v33 }
  0x2d   : > { %713 = vmatpush.bf16.msra.mxu2 %v648_v33  ;;  %714 = vmatpush.bf16.msra.mxu3 %v648_v33  ;;  %v687_v33 = vunpack.c.h.bf16 %v693_v1 }
  0x30   : > { %425 = vmatpush.bf16.msra.mxu0 %v647_v41  ;;  %715 = vmatpush.bf16.msra.mxu1 %v647_v41 }
  0x31   : > { %716 = vmatpush.bf16.msra.mxu2 %v647_v41  ;;  %717 = vmatpush.bf16.msra.mxu3 %v647_v41 }
  0x33   : > { %426 = vmatmul.bf16.vlgmr.msra.gmra.mxu0 %v366_v46  ;;  %431 = vmatmul.bf16.vlgmr.msra.gmra.mxu1 %v367_v47 }
  0x34   : > { %436 = vmatmul.bf16.vlgmr.msra.gmra.mxu2 %v368_v48  ;;  %441 = vmatmul.bf16.vlgmr.msra.gmra.mxu3 %v369_v49 }
  0xb0   : > { %v427_v54 = vpop.f32.mrf.mxu0  ;;  %v432_v55 = vpop.f32.mrf.mxu1 }
  0xb1   : > { %v451_v56 = vmul.f32 %v761_v50, %v427_v54  ;;  %v453_v58 = vmul.f32 %v761_v50, %v432_v55 }
  0xb3   : > { %v463_v60 = vadd.f32 %v762_v53, %v451_v56  ;;  %v465_v61 = vadd.f32 %v762_v53, %v453_v58 }
  0xb5   : > { %v487_v62 = vadd.f32 %v674_v57, %v463_v60  ;;  %v489_v63 = vadd.f32 %v678_v59, %v465_v61 }
  0xb7   : > { %v495_v2 = vmax.f32 %v487_v62, 0.0  ;;  %v497_v3 = vmax.f32 %v489_v63, 0.0  ;;  %v437_v4 = vpop.f32.mrf.mxu2  ;;  %v442_v5 = vpop.f32.mrf.mxu3 }
  0xb8   : > { %v455_v6 = vmul.f32 %v761_v50, %v437_v4  ;;  %v457_v8 = vmul.f32 %v761_v50, %v442_v5  ;;  %v429_v10 = vpop.f32.mrf.mxu0  ;;  %v434_v11 = vpop.f32.mrf.mxu1 }
  0xb9   : > { %503 = vst [vmem:[%s970_s18] sm:$0xff] %v495_v2  ;;  %v452_v12 = vmul.f32 %v761_v50, %v429_v10  ;;  %v454_v14 = vmul.f32 %v761_v50, %v434_v11 }
  0xba   : > { %505 = vst [vmem:[%s970_s18 + $0x10] sm:$0xff] %v497_v3  ;;  %v467_v16 = vadd.f32 %v762_v53, %v455_v6  ;;  %v469_v17 = vadd.f32 %v762_v53, %v457_v8 }
  0xbb   : > { %v464_v18 = vadd.f32 %v762_v53, %v452_v12  ;;  %v466_v19 = vadd.f32 %v762_v53, %v454_v14 }
  0xbc   : > { %v491_v20 = vadd.f32 %v682_v7, %v467_v16  ;;  %v493_v21 = vadd.f32 %v686_v9, %v469_v17 }
  0xbd   : > { %v488_v22 = vadd.f32 %v675_v13, %v464_v18  ;;  %v490_v23 = vadd.f32 %v679_v15, %v466_v19 }
  0xbe   : > { %v499_v24 = vmax.f32 %v491_v20, 0.0  ;;  %v501_v25 = vmax.f32 %v493_v21, 0.0 }
  0xbf   : > { %v496_v26 = vmax.f32 %v488_v22, 0.0  ;;  %v498_v27 = vmax.f32 %v490_v23, 0.0  ;;  %v439_v28 = vpop.f32.mrf.mxu2  ;;  %v444_v29 = vpop.f32.mrf.mxu3 }
  0xc0   : > { %507 = vst [vmem:[%s970_s18 + $0x20] sm:$0xff] %v499_v24  ;;  %v456_v30 = vmul.f32 %v761_v50, %v439_v28  ;;  %v458_v32 = vmul.f32 %v761_v50, %v444_v29 }
  0xc1   : > { %509 = vst [vmem:[%s970_s18 + $0x30] sm:$0xff] %v501_v25 }
  0xc2   : > { %504 = vst [vmem:[%s970_s18 + $0x8] sm:$0xff] %v496_v26  ;;  %v468_v34 = vadd.f32 %v762_v53, %v456_v30  ;;  %v470_v35 = vadd.f32 %v762_v53, %v458_v32 }
  0xc3   : > { %506 = vst [vmem:[%s970_s18 + $0x18] sm:$0xff] %v498_v27 }
  0xc4   : > { %v492_v36 = vadd.f32 %v683_v31, %v468_v34  ;;  %v494_v37 = vadd.f32 %v687_v33, %v470_v35 }
  0xc6   : > { %v500_v38 = vmax.f32 %v492_v36, 0.0  ;;  %v502_v39 = vmax.f32 %v494_v37, 0.0 }
  0xc8   : > { %508 = vst [vmem:[%s970_s18 + $0x28] sm:$0xff] %v500_v38 }
  0xc9   : > { %510 = vst [vmem:[%s970_s18 + $0x38] sm:$0xff] %v502_v39 }
  0xca   : > { %790 = shalt.err (!%p787_p3)
}
  0xcb   : > { %s827_s21 = smov 128   ;;  %s828_s18 = smov 8  }
  0xcc   : > { %718 = dma.vmem_to_hbm [thread:$0]  (%p907_p5), %s525_s28, 1024, %s527_s9, %s512_s13, %s827_s21, %s827_s21, %s828_s18  }
  0xcd PF: > { %p724_p4 = scmp.ge.s32.totalorder %s825_s27, 2  ;;  %s541_s23 = sand.u32 1, %s813_s24  }
  0xce   : > { %s542_s29 = scalar_lea.sflag [#allocation3], %s541_s23 }
  0xcf   : > { %p721_p7 = pnand %p724_p4, %p911_p6 }
  0xd1   : > { %p722_p8 = pneg %p721_p7 }
  0xd3   : > { %808 = dma.done.wait (%p722_p8), %s542_s29, 1024  }
  0xd4   : > { %810 = vsyncadd (%p722_p8), %s542_s29, 4294966272  ;;  %p17_p9 = scmp.ge.s32.totalorder %s894_s30, 4   ;;  %s1024_s24 = smov %s817_s25 }
  0xd5   : > { %s1025_s25 = smov %s821_s26  ;;  %s1026_s26 = smov %s905_s10 }
  0xd6   : > { %s1027_s27 = smov %s894_s30  ;;  %19 = sbr.rel (!%p17_p9) target bundleno = 3 (0x3), region = 86 }
  0xdb   :  { %548 = vsyncpa [#allocation3], 1 }
  0xdc   :  { %550 = vsyncpa [#allocation3 + $0x1], 1 }

// kernel: bottleneck_forward.5
= control target key start
LH: loop header
LB: loop body
LE: loop exit
PB: predicated region body
PF: predicated region fallthrough
CT: control target
= control target key end

     0   :  { %s2961_s18 = smov 0   ;;  %s3618_s0 = inlined_call_operand.vmem [shape: bf16[128,128], index: 0, kind: input, shape index: {}]   ;;  %s3619_s1 = inlined_call_operand.vmem [shape: f32[1,128], index: 1, kind: input, shape index: {}]   ;;  %s3620_s2 = inlined_call_operand.vmem [shape: f32[1,128], index: 2, kind: input, shape index: {}]   ;;  %s3621_s3 = inlined_call_operand.vmem [shape: bf16[9,128,128], index: 3, kind: input, shape index: {}]   ;;  %s3622_s4 = inlined_call_operand.vmem [shape: bf16[128,128], index: 4, kind: output, shape index: {0}]   ;;  %s3623_s5 = inlined_call_operand.vmem [shape: f32[2,2,128], index: 5, kind: output, shape index: {1}]  }
   0x1 LB: > { %s2967_s19 = sadd.s32 4294967295, %s2928_s18   ;;  %p2273_p0 = scmp.ge.s32.totalorder %s2928_s18, 1  ;;  %s2928_s18 = sphi %s2961_s18, %s16_s18  }
   0x2   : > { %p191_p1 = scmp.lt.s32.totalorder %s2928_s18, 3 }
   0x4   : > { %p192_p2 = pnand %p2273_p0, %p191_p1 }
   0x5   : > { %s2274_s22 = sshll.u32 (!%p192_p2), %s2967_s19, 3  ;;  %p235_p4 = scmp.lt.s32.totalorder (!%p192_p2), %s2967_s19, 1 }
   0x6   : > { %195 = sbr.rel (%p192_p2) target bundleno = 361 (0x169), region = 36  ;;  %p224_p3 = scmp.lt.s32.totalorder (!%p192_p2), %s2274_s22, 15 }
   0xb   : > { %v2788_v0 = vld [vmem:[%s3621_s3 + $0x78] sm:$0xff]  ;;  %v2787_v2 = vld [vmem:[%s3621_s3 + $0x70] sm:$0xff]  ;;  %s3635_s22 = smov (!%p224_p3, %s2274_s22), 15  ;;  %v2786_v5 = vld [vmem:[%s3621_s3 + $0x68] sm:$0xff]  ;;  %vm302_vm0 = vcmask 1040384   ;;  %v2930_v14 = vmov 0  }
   0xc   : > { %v2796_v1 = vld [vmem:[%s3621_s3 + $0xb8] sm:$0xff]  ;;  %2895 = vmatpush.bf16.msra.mxu1 %v2788_v0  ;;  %713 = vmatpush.bf16.msra.mxu0 %v2788_v0  ;;  %v2795_v3 = vld [vmem:[%s3621_s3 + $0xb0] sm:$0xff]  ;;  %vm303_vm1 = vsmask.f32 256  ;;  %v2794_v6 = vld [vmem:[%s3621_s3 + $0xa8] sm:$0xff]  ;;  %s2275_s12 = sshll.u32 %s3635_s22, 2 }
   0xd   : > { %983 = vmatpush.bf16.msra.mxu2 %v2796_v1  ;;  %v2808_v4 = vld [vmem:[%s3621_s3 + $0xf8] sm:$0xff]  ;;  %v2807_v7 = vld [vmem:[%s3621_s3 + $0xf0] sm:$0xff]  ;;  %vm329_vm2 = vsmask.f32 7938  ;;  %s3004_s15 = scalar_lea.vmem %s3618_s0, %s2275_s12  ;;  %v3009_v8 = vld [vmem:[%s3619_s1] ss:$0 sm:$0xff]  ;;  %s3595_s27 = scalar_lea.vmem %s3622_s4, %s2275_s12 }
   0xe   : > { %1117 = vmatpush.bf16.msra.mxu3 %v2808_v4  ;;  %v3014_v9 = vld [vmem:[%s3620_s2] ss:$0 sm:$0xff]  ;;  %v2806_v10 = vld [vmem:[%s3621_s3 + $0xe8] sm:$0xff]  ;;  %v2890_v12 = vld [vmem:[%s3004_s15 + $0x10] sm:$0xff]   ;;  %296 = vst [vmem:[#allocation2] sm:$0xf] %v2930_v14 }
   0xf   : > { %v3020_v11 = vld [vmem:[%s3004_s15 + $0x8] sm:$0xff]   ;;  %vm3025_vm3 = vmand %vm302_vm0, %vm303_vm1  ;;  %v2785_v15 = vld [vmem:[%s3621_s3 + $0x60] sm:$0xff]  ;;  %v2863_v17 = vunpack.c.l.bf16 %v2890_v12  ;;  %297 = vst [vmem:[#allocation2 + $0x4] sm:$0x1] %v2930_v14  ;;  %v2864_v26 = vunpack.c.h.bf16 %v2890_v12  ;;  %vm435_vm5 = vcmask 1043456   ;;  %vm867_vm9 = vcmask 1042432  }
  0x10   : > { %2896 = vmatpush.bf16.msra.mxu1 %v2787_v2  ;;  %714 = vmatpush.bf16.msra.mxu0 %v2787_v2  ;;  %v2860_v16 = vunpack.c.h.bf16 %v3020_v11  ;;  %v314_v18 = vld [vmem:[#allocation2 + $0x20] sm:$0x1]  ;;  %v317_v19 = vld [vmem:[#allocation2 + $0x28] sm:$0x1]  ;;  %vm3036_vm4 = vmand %vm302_vm0, %vm329_vm2  ;;  %v2859_v51 = vunpack.c.l.bf16 %v3020_v11  ;;  %299 = vst [vmem:[#allocation2 + $0x48] sm:$0xf] %v2930_v14 }
  0x11   : > { %984 = vmatpush.bf16.msra.mxu2 %v2795_v3  ;;  %v2793_v21 = vld [vmem:[%s3621_s3 + $0xa0] sm:$0xff]  ;;  %v315_v22 = vsel %vm3025_vm3, 0, %v314_v18  ;;  %v318_v23 = vsel %vm3025_vm3, 0, %v317_v19  ;;  %v343_v25 = vld [vmem:[#allocation2 + $0x2c] sm:$0x1]  ;;  %v264_v28 = vmul.f32 %v3009_v8, %v2863_v17  ;;  %v3058_v32 = vld [vmem:[%s3004_s15 + $0x18] sm:$0xff]   ;;  %v265_v43 = vmul.f32 %v3009_v8, %v2864_v26 }
  0x12   : > { %1118 = vmatpush.bf16.msra.mxu3 %v2807_v7  ;;  %v340_v24 = vld [vmem:[#allocation2 + $0x24] sm:$0x1]  ;;  %v263_v27 = vmul.f32 %v3009_v8, %v2860_v16  ;;  %316 = vst [vmem:[#allocation2 + $0x20] sm:$0x1] %v315_v22  ;;  %v344_v30 = vsel %vm3036_vm4, 0, %v343_v25  ;;  %v2784_v40 = vld [vmem:[%s3621_s3 + $0x58] sm:$0xff]  ;;  %v2867_v42 = vunpack.c.l.bf16 %v3058_v32  ;;  %v262_v18 = vmul.f32 %v3009_v8, %v2859_v51  ;;  %vm3113_vm6 = vmand %vm435_vm5, %vm329_vm2 }
  0x13   : > { %v341_v29 = vsel %vm3036_vm4, 0, %v340_v24  ;;  %v3055_v31 = vld [vmem:[%s3004_s15] sm:$0xff]   ;;  %319 = vst [vmem:[#allocation2 + $0x28] sm:$0x1] %v318_v23  ;;  %v305_v34 = vld [vmem:[#allocation2 + $0x8] sm:$0x1]  ;;  %v276_v37 = vadd.f32 %v3014_v9, %v264_v28  ;;  %v3088_v61 = vadd.f32 %v3014_v9, %v265_v43 }
  0x14   : > { %2897 = vmatpush.bf16.msra.mxu1 %v2786_v5  ;;  %715 = vmatpush.bf16.msra.mxu0 %v2786_v5  ;;  %v2855_v33 = vunpack.c.l.bf16 %v3055_v31  ;;  %v331_v35 = vld [vmem:[#allocation2 + $0xc] sm:$0x1]  ;;  %v275_v36 = vadd.f32 %v3014_v9, %v263_v27  ;;  %342 = vst [vmem:[#allocation2 + $0x24] sm:$0x1] %v341_v29  ;;  %v306_v38 = vsel %vm3025_vm3, 0, %v305_v34  ;;  %v2792_v47 = vld [vmem:[%s3621_s3 + $0x98] sm:$0xff]  ;;  %v2856_v50 = vunpack.c.h.bf16 %v3055_v31 }
  0x15   : > { %985 = vmatpush.bf16.msra.mxu2 %v2794_v6  ;;  %v332_v39 = vsel %vm3036_vm4, 0, %v331_v35  ;;  %345 = vst [vmem:[#allocation2 + $0x2c] sm:$0x1] %v344_v30  ;;  %v284_v45 = vmax.f32 %v276_v37, 0.0  ;;  %v485_v46 = vld [vmem:[#allocation2] sm:$0xf]  ;;  %v266_v60 = vmul.f32 %v3009_v8, %v2867_v42 }
  0x16   : > { %1119 = vmatpush.bf16.msra.mxu3 %v2806_v10  ;;  %v260_v41 = vmul.f32 %v3009_v8, %v2855_v33  ;;  %v283_v44 = vmax.f32 %v275_v36, 0.0  ;;  %307 = vst [vmem:[#allocation2 + $0x8] sm:$0x1] %v306_v38  ;;  %v3077_v49 = vld [vmem:[#allocation2 + $0x4] sm:$0x1]  ;;  %v521_v55 = vshrl.u32 %v485_v46, 16  ;;  %v261_v17 = vmul.f32 %v3009_v8, %v2856_v50 }
  0x17   : > { %333 = vst [vmem:[#allocation2 + $0xc] sm:$0x1] %v332_v39  ;;  %v292_v53 = vpack.c.bf16 %v284_v45, %v284_v45  ;;  %v2805_v54 = vld [vmem:[%s3621_s3 + $0xe0] sm:$0xff]  ;;  %v524_v56 = vshll.u32 %v485_v46, 16  ;;  %v320_v57 = vld [vmem:[#allocation2 + $0x30] sm:$0x1]  ;;  %v278_v25 = vadd.f32 %v3014_v9, %v266_v60 }
  0x18   : > { %2898 = vmatpush.bf16.msra.mxu1 %v2785_v15  ;;  %716 = vmatpush.bf16.msra.mxu0 %v2785_v15  ;;  %v272_v48 = vadd.f32 %v3014_v9, %v260_v41  ;;  %v291_v52 = vpack.c.bf16 %v283_v44, %v283_v44  ;;  %v530_v59 = vshll.u32 %v3077_v49, 16  ;;  %v2783_v62 = vld [vmem:[%s3621_s3 + $0x50] sm:$0xff]  ;;  %v3096_v6 = vrot.slane %v521_v55, 4  ;;  %v2804_v10 = vld [vmem:[%s3621_s3 + $0xd8] sm:$0xff]  ;;  %300 = vst [vmem:[#allocation2 + $0x4c] sm:$0x1] %v2930_v14 }
  0x19   : > { %986 = vmatpush.bf16.msra.mxu2 %v2793_v21  ;;  %v2791_v63 = vld [vmem:[%s3621_s3 + $0x90] sm:$0xff]  ;;  %v388_v2 = vshrl.u32 %v292_v53, 16  ;;  %v391_v3 = vshll.u32 %v292_v53, 16  ;;  %v455_v4 = vld [vmem:[#allocation2 + $0x20] sm:$0xf]  ;;  %v3098_v7 = vrot.slane %v524_v56, 5  ;;  %v3138_v44 = vadd.f32 %v3014_v9, %v261_v17 }
  0x1a   : > { %v280_v58 = vmax.f32 %v272_v48, 0.0  ;;  %v380_v0 = vshrl.u32 %v291_v52, 16  ;;  %v383_v1 = vshll.u32 %v291_v52, 16  ;;  %1120 = vmatpush.bf16.msra.mxu3 %v2805_v54  ;;  %v321_v11 = vsel %vm3025_vm3, 0, %v320_v57  ;;  %v461_v16 = vld [vmem:[#allocation2 + $0x28] sm:$0xf] }
  0x1b   : > { %v390_v15 = vrot.slane %v388_v2, 7  ;;  %v2782_v19 = vld [vmem:[%s3621_s3 + $0x48] sm:$0xff]  ;;  %v458_v22 = vld [vmem:[#allocation2 + $0x24] sm:$0x1]  ;;  %vm517_vm7 = vsmask.f32 3328  ;;  %v527_v35 = vor.u32 %v3098_v7, %v3096_v6  ;;  %v3160_v57 = vadd.f32 %v3014_v9, %v262_v18 }
  0x1c   : > { %2899 = vmatpush.bf16.msra.mxu1 %v2784_v40  ;;  %717 = vmatpush.bf16.msra.mxu0 %v2784_v40  ;;  %v288_v5 = vpack.c.bf16 %v280_v58, %v280_v58  ;;  %v382_v12 = vrot.slane %v380_v0, 7  ;;  %vm518_vm8 = vsmask.f32 7440  ;;  %v3117_v14 = vrot.slane %v530_v59, 5  ;;  %v464_v30 = vld [vmem:[#allocation2 + $0x2c] sm:$0x1] }
  0x1d   : > { %987 = vmatpush.bf16.msra.mxu2 %v2792_v47  ;;  %v393_v28 = vor.u32 %v391_v3, %v390_v15  ;;  %v394_v29 = vrot.slane %v390_v15, 4  ;;  %v843_v31 = vld [vmem:[#allocation2] sm:$0xe]  ;;  %v2790_v33 = vld [vmem:[%s3621_s3 + $0x88] sm:$0xff]  ;;  %vm868_vm10 = vcmask 1046532   ;;  %v2803_v36 = vld [vmem:[%s3621_s3 + $0xd0] sm:$0xff] }
  0x1e   : > { %v356_v23 = vshrl.u32 %v288_v5, 16  ;;  %v359_v24 = vshll.u32 %v288_v5, 16  ;;  %v385_v26 = vor.u32 %v383_v1, %v382_v12  ;;  %v386_v27 = vrot.slane %v382_v12, 4  ;;  %1121 = vmatpush.bf16.msra.mxu3 %v2804_v10  ;;  %v323_v37 = vld [vmem:[#allocation2 + $0x38] sm:$0x1]  ;;  %v2781_v38 = vld [vmem:[%s3621_s3 + $0x40] sm:$0xff]  ;;  %vm3153_vm11 = vmor %vm867_vm9, %vm868_vm10 }
  0x1f   : > { %v462_v41 = vsel %vm3113_vm6, %v393_v28, %v461_v16  ;;  %v437_v42 = vld [vmem:[#allocation2 + $0x8] sm:$0xf]  ;;  %v440_v43 = vld [vmem:[#allocation2 + $0xc] sm:$0x1]  ;;  %322 = vst [vmem:[#allocation2 + $0x30] sm:$0x1] %v321_v11  ;;  %v465_v45 = vsel %vm3025_vm3, %v394_v29, %v464_v30  ;;  %vm3196_vm12 = vmor %vm517_vm7, %vm518_vm8 }
  0x20   : > { %2900 = vmatpush.bf16.msra.mxu1 %v2783_v62  ;;  %718 = vmatpush.bf16.msra.mxu0 %v2783_v62  ;;  %v358_v34 = vrot.slane %v356_v23, 7  ;;  %v456_v39 = vsel %vm3113_vm6, %v385_v26, %v455_v4  ;;  %v459_v40 = vsel %vm3025_vm3, %v386_v27, %v458_v22  ;;  %v2780_v46 = vld [vmem:[%s3621_s3 + $0x38] sm:$0xff]  ;;  %v2789_v47 = vld [vmem:[%s3621_s3 + $0x80] sm:$0xff]  ;;  %v2375_v51 = vrot.slane %v843_v31, 9  ;;  %463 = vst [vmem:[#allocation2 + $0x28] sm:$0xf] %v462_v41 }
  0x21   : > { %988 = vmatpush.bf16.msra.mxu2 %v2791_v63  ;;  %457 = vst [vmem:[#allocation2 + $0x20] sm:$0xf] %v456_v39  ;;  %v2816_v52 = vld [vmem:[%s3621_s3 + $0x138] sm:$0xff]  ;;  %v872_v54 = vrot.slane %v3077_v49, 5  ;;  %v285_v55 = vmax.f32 %v3088_v61, 0.0  ;;  %v286_v56 = vmax.f32 %v278_v25, 0.0 }
  0x22   : > { %v361_v48 = vor.u32 %v359_v24, %v358_v34  ;;  %v362_v50 = vrot.slane %v358_v34, 4  ;;  %460 = vst [vmem:[#allocation2 + $0x24] sm:$0x1] %v459_v40  ;;  %v3166_v60 = vrot.slane %v527_v35, 4  ;;  %1122 = vmatpush.bf16.msra.mxu3 %v2803_v36  ;;  %v2802_v49 = vld [vmem:[%s3621_s3 + $0xc8] sm:$0xff]  ;;  %v324_v0 = vsel %vm3025_vm3, 0, %v323_v37 }
  0x23   : > { %v346_v61 = vld [vmem:[#allocation2 + $0x34] sm:$0x1]  ;;  %466 = vst [vmem:[#allocation2 + $0x2c] sm:$0x1] %v465_v45  ;;  %v293_v62 = vpack.c.bf16 %v285_v55, %v285_v55  ;;  %v294_v63 = vpack.c.bf16 %v286_v56, %v286_v56  ;;  %v349_v1 = vld [vmem:[#allocation2 + $0x3c] sm:$0x1]  ;;  %v3179_v4 = vsel %vm3153_vm11, %v2375_v51, %v872_v54 }
  0x24   : > { %2901 = vmatpush.bf16.msra.mxu1 %v2782_v19  ;;  %719 = vmatpush.bf16.msra.mxu0 %v2782_v19  ;;  %v438_v58 = vsel %vm3113_vm6, %v361_v48, %v437_v42  ;;  %v441_v59 = vsel %vm3025_vm3, %v362_v50, %v440_v43  ;;  %v281_v2 = vmax.f32 %v3138_v44, 0.0  ;;  %v2779_v3 = vld [vmem:[%s3621_s3 + $0x30] sm:$0xff]  ;;  %v347_v5 = vsel %vm3036_vm4, 0, %v346_v61  ;;  %325 = vst [vmem:[#allocation2 + $0x38] sm:$0x1] %v324_v0  ;;  %v2778_v30 = vld [vmem:[%s3621_s3 + $0x28] sm:$0xff] }
  0x25   : > { %989 = vmatpush.bf16.msra.mxu2 %v2790_v33  ;;  %439 = vst [vmem:[#allocation2 + $0x8] sm:$0xf] %v438_v58  ;;  %v350_v6 = vsel %vm3036_vm4, 0, %v349_v1  ;;  %v3185_v7 = vld [vmem:[#allocation2 + $0x10] sm:$0x1]  ;;  %v396_v11 = vshrl.u32 %v293_v62, 16  ;;  %v533_v29 = vsel %vm3196_vm12, %v3166_v60, %v3117_v14  ;;  %v919_v31 = vunpack.c.l.b16 %v3179_v4 }
  0x26   : > { %442 = vst [vmem:[#allocation2 + $0xc] sm:$0x1] %v441_v59  ;;  %v2815_v10 = vld [vmem:[%s3621_s3 + $0x130] sm:$0xff]  ;;  %v399_v12 = vshll.u32 %v293_v62, 16  ;;  %v404_v15 = vshrl.u32 %v294_v63, 16  ;;  %v282_v16 = vmax.f32 %v3160_v57, 0.0  ;;  %1123 = vmatpush.bf16.msra.mxu3 %v2802_v49  ;;  %v3222_v40 = vpack.c.bf16 %v281_v2, %v281_v2 }
  0x27   : > { %v407_v17 = vshll.u32 %v294_v63, 16  ;;  %v467_v18 = vld [vmem:[#allocation2 + $0x30] sm:$0xf]  ;;  %v309_v19 = vsel %vm3025_vm3, 0, %v3185_v7  ;;  %348 = vst [vmem:[#allocation2 + $0x34] sm:$0x1] %v347_v5 }
  0x28   : > { %2902 = vmatpush.bf16.msra.mxu1 %v2781_v38  ;;  %720 = vmatpush.bf16.msra.mxu0 %v2781_v38  ;;  %v489_v22 = vld [vmem:[#allocation2 + $0x20] sm:$0xf]  ;;  %v398_v24 = vrot.slane %v396_v11, 7  ;;  %v3200_v25 = vrot.slane %v404_v15, 7  ;;  %351 = vst [vmem:[#allocation2 + $0x3c] sm:$0x1] %v350_v6 }
  0x29   : > { %990 = vmatpush.bf16.msra.mxu2 %v2789_v47  ;;  %v3202_v26 = vld [vmem:[#allocation2 + $0x24] sm:$0x1]  ;;  %v577_v27 = vshrl.u32 %v489_v22, 16  ;;  %v580_v28 = vshll.u32 %v489_v22, 16  ;;  %v490_v33 = vld [vmem:[#allocation2 + $0x28] sm:$0xf] }
  0x2a   : > { %v586_v34 = vshll.u32 %v3202_v26, 16  ;;  %v2814_v35 = vld [vmem:[%s3621_s3 + $0x128] sm:$0xff]  ;;  %v401_v36 = vor.u32 %v399_v12, %v398_v24  ;;  %v402_v37 = vrot.slane %v398_v24, 4  ;;  %v2836_v38 = vld [vmem:[%s3621_s3 + $0x1b8] sm:$0xff]  ;;  %v2801_v39 = vld [vmem:[%s3621_s3 + $0xc0] sm:$0xff]  ;;  %v591_v44 = vshrl.u32 %v490_v33, 16 }
  0x2b   : > { %v3224_v41 = vld [vmem:[#allocation2 + $0x2c] sm:$0x1]  ;;  %v579_v42 = vrot.slane %v577_v27, 4  ;;  %v582_v43 = vrot.slane %v580_v28, 5  ;;  %v594_v45 = vshll.u32 %v490_v33, 16  ;;  %v409_v51 = vor.u32 %v407_v17, %v3200_v25  ;;  %1124 = vmatpush.bf16.msra.mxu3 %v2801_v39  ;;  %v2777_v5 = vld [vmem:[%s3621_s3 + $0x20] sm:$0xff] }
  0x2c   : > { %814 = vmatpush.bf16.msrb.mxu1 %v2780_v46  ;;  %1363 = vmatpush.bf16.msrb.mxu0 %v2816_v52  ;;  %v588_v46 = vrot.slane %v586_v34, 5  ;;  %v600_v47 = vshll.u32 %v3224_v41, 16  ;;  %v486_v48 = vld [vmem:[#allocation2 + $0x8] sm:$0xf]  ;;  %v468_v52 = vsel %vm3113_vm6, %v401_v36, %v467_v18  ;;  %v593_v55 = vrot.slane %v591_v44, 4  ;;  %v2813_v18 = vld [vmem:[%s3621_s3 + $0x120] sm:$0xff] }
  0x2d   : > { %v844_v50 = vld [vmem:[#allocation2 + $0x8] sm:$0xe]  ;;  %1672 = vmatpush.bf16.msrb.mxu2 %v2836_v38  ;;  %v583_v54 = vor.u32 %v582_v43, %v579_v42  ;;  %v596_v56 = vrot.slane %v594_v45, 5  ;;  %v510_v58 = vld [vmem:[#allocation2 + $0xc] sm:$0x1]  ;;  %v535_v59 = vshrl.u32 %v486_v48, 16  ;;  %v290_v42 = vpack.c.bf16 %v282_v16, %v282_v16 }
  0x2e   : > { %v602_v49 = vrot.slane %v600_v47, 5  ;;  %v538_v61 = vshll.u32 %v486_v48, 16  ;;  %v544_v62 = vshll.u32 %v510_v58, 16  ;;  %v2376_v63 = vrot.slane %v844_v50, 9  ;;  %469 = vst [vmem:[#allocation2 + $0x30] sm:$0xf] %v468_v52 }
  0x2f   : > { %v584_v0 = vrot.slane %v583_v54, 4  ;;  %v597_v1 = vor.u32 %v596_v56, %v593_v55  ;;  %v537_v2 = vrot.slane %v535_v59, 4  ;;  %v470_v6 = vld [vmem:[#allocation2 + $0x34] sm:$0x1]  ;;  %v410_v12 = vrot.slane %v3200_v25, 4  ;;  %v2812_v54 = vld [vmem:[%s3621_s3 + $0x118] sm:$0xff] }
  0x30   : > { %815 = vmatpush.bf16.msrb.mxu1 %v2779_v3  ;;  %1364 = vmatpush.bf16.msrb.mxu0 %v2815_v10  ;;  %v876_v3 = vrot.slane %v510_v58, 5  ;;  %v540_v10 = vrot.slane %v538_v61, 5  ;;  %v546_v11 = vrot.slane %v544_v62, 5  ;;  %v471_v15 = vsel %vm3025_vm3, %v402_v37, %v470_v6  ;;  %v473_v17 = vld [vmem:[#allocation2 + $0x38] sm:$0xf]  ;;  %v2775_v60 = vld [vmem:[%s3621_s3 + $0x10] sm:$0xff] }
  0x31   : > { %v589_v22 = vsel %vm3196_vm12, %v584_v0, %v588_v46  ;;  %v598_v24 = vrot.slane %v597_v1, 4  ;;  %472 = vst [vmem:[#allocation2 + $0x34] sm:$0x1] %v471_v15  ;;  %v474_v28 = vsel %vm3113_vm6, %v409_v51, %v473_v17  ;;  %v476_v25 = vld [vmem:[#allocation2 + $0x3c] sm:$0x1]  ;;  %v649_v16 = vunpack.c.l.b16 %v533_v29  ;;  %v2835_v55 = vld [vmem:[%s3621_s3 + $0x1b0] sm:$0xff] }
  0x32   : > { %v877_v27 = vsel %vm3153_vm11, %v2376_v63, %v876_v3  ;;  %v653_v33 = vunpack.c.l.b16 %v589_v22  ;;  %v541_v34 = vor.u32 %v540_v10, %v537_v2  ;;  %475 = vst [vmem:[#allocation2 + $0x38] sm:$0xf] %v474_v28  ;;  %v477_v36 = vsel %vm3025_vm3, %v410_v12, %v476_v25  ;;  %v311_v37 = vld [vmem:[#allocation2 + $0x18] sm:$0x1]  ;;  %v334_v38 = vld [vmem:[#allocation2 + $0x14] sm:$0x1]  ;;  %1673 = vmatpush.bf16.msrb.mxu2 %v2835_v55 }
  0x33   : > { %v603_v39 = vsel %vm3196_vm12, %v598_v24, %v602_v49  ;;  %478 = vst [vmem:[#allocation2 + $0x3c] sm:$0x1] %v477_v36  ;;  %v312_v43 = vsel %vm3025_vm3, 0, %v311_v37  ;;  %v335_v44 = vsel %vm3036_vm4, 0, %v334_v38  ;;  %v337_v45 = vld [vmem:[#allocation2 + $0x1c] sm:$0x1] }
  0x34   : > { %816 = vmatpush.bf16.msrb.mxu1 %v2778_v30  ;;  %1365 = vmatpush.bf16.msrb.mxu0 %v2814_v35  ;;  %v2776_v30 = vld [vmem:[%s3621_s3 + $0x18] sm:$0xff]  ;;  %v920_v35 = vunpack.c.l.b16 %v877_v27  ;;  %v654_v46 = vunpack.c.l.b16 %v603_v39  ;;  %v542_v47 = vrot.slane %v541_v34, 4  ;;  %310 = vst [vmem:[#allocation2 + $0x10] sm:$0x1] %v309_v19  ;;  %v338_v57 = vsel %vm3036_vm4, 0, %v337_v45  ;;  %v2811_v61 = vld [vmem:[%s3621_s3 + $0x110] sm:$0xff] }
  0x35   : > { %v491_v50 = vld [vmem:[#allocation2 + $0x30] sm:$0xf]  ;;  %313 = vst [vmem:[#allocation2 + $0x18] sm:$0x1] %v312_v43  ;;  %v364_v4 = vshrl.u32 %v3222_v40, 16  ;;  %v375_v49 = vshll.u32 %v290_v42, 16 }
  0x36   : > { %v927_v48 = vpack.c.b16 %v920_v35, %v919_v31  ;;  %v367_v31 = vshll.u32 %v3222_v40, 16  ;;  %v659_v51 = vpack.c.b16 %v654_v46, %v653_v33  ;;  %v547_v7 = vsel %vm3196_vm12, %v542_v47, %v546_v11  ;;  %336 = vst [vmem:[#allocation2 + $0x14] sm:$0x1] %v335_v44  ;;  %v2844_v3 = vld [vmem:[%s3621_s3 + $0x1f8] sm:$0xff]  ;;  %v2774_v22 = vld [vmem:[%s3621_s3 + $0x8] sm:$0xff]  ;;  %v2773_v47 = vld [vmem:[%s3621_s3] sm:$0xff] }
  0x37   : > { %v605_v19 = vshrl.u32 %v491_v50, 16  ;;  %v608_v52 = vshll.u32 %v491_v50, 16  ;;  %v650_v14 = vunpack.c.l.b16 %v547_v7  ;;  %339 = vst [vmem:[#allocation2 + $0x1c] sm:$0x1] %v338_v57  ;;  %v366_v29 = vrot.slane %v364_v4, 7  ;;  %v2810_v24 = vld [vmem:[%s3621_s3 + $0x108] sm:$0xff]  ;;  %1918 = vmatpush.bf16.msrb.mxu3 %v2844_v3 }
  0x38   : > { %817 = vmatpush.bf16.msrb.mxu1 %v2777_v5  ;;  %1366 = vmatpush.bf16.msrb.mxu0 %v2813_v18  ;;  %v372_v40 = vshrl.u32 %v290_v42, 16  ;;  %v3285_v56 = vld [vmem:[#allocation2 + $0x34] sm:$0x1]  ;;  %v2834_v34 = vld [vmem:[%s3621_s3 + $0x1a8] sm:$0xff]  ;;  %v2824_v57 = vld [vmem:[%s3621_s3 + $0x178] sm:$0xff]  ;;  %s3637_s19 = smov (!%p235_p4, %s2967_s19), 1 }
  0x39   : > { %991 = vmatmul.bf16.vlgmr.msra.gmra.mxu2 %v927_v48  ;;  %731 = vmatmul.bf16.vlgmr.msra.gmra.mxu1 %v659_v51  ;;  %v607_v58 = vrot.slane %v605_v19, 4  ;;  %v610_v59 = vrot.slane %v608_v52, 5  ;;  %v657_v62 = vpack.c.b16 %v650_v14, %v649_v16  ;;  %v492_v63 = vld [vmem:[#allocation2 + $0x38] sm:$0xf]  ;;  %v614_v0 = vshll.u32 %v3285_v56, 16  ;;  %v2809_v16 = vld [vmem:[%s3621_s3 + $0x100] sm:$0xff] }
  0x3a   : > { %v369_v1 = vor.u32 %v367_v31, %v366_v29  ;;  %v370_v2 = vrot.slane %v366_v29, 4  ;;  %v3294_v5 = vld [vmem:[#allocation2 + $0x3c] sm:$0x1]  ;;  %v619_v10 = vshrl.u32 %v492_v63, 16  ;;  %v622_v11 = vshll.u32 %v492_v63, 16  ;;  %1674 = vmatpush.bf16.msrb.mxu2 %v2834_v34  ;;  %v2837_v13 = vld [vmem:[%s3621_s3 + $0x1c0] sm:$0xff] }
  0x3b   : > { %v611_v6 = vor.u32 %v610_v59, %v607_v58  ;;  %v374_v12 = vrot.slane %v372_v40, 7  ;;  %721 = vmatmul.bf16.vlgmr.msra.gmra.mxu0 %v657_v62  ;;  %v616_v15 = vrot.slane %v614_v0, 5  ;;  %v628_v17 = vshll.u32 %v3294_v5, 16  ;;  %v443_v18 = vld [vmem:[#allocation2 + $0x10] sm:$0xf]  ;;  %s2278_s22 = sshll.u32 %s3637_s19, 1 }
  0x3c   : > { %818 = vmatpush.bf16.msrb.mxu1 %v2776_v30  ;;  %1367 = vmatpush.bf16.msrb.mxu0 %v2812_v54  ;;  %v621_v28 = vrot.slane %v619_v10, 4  ;;  %v624_v25 = vrot.slane %v622_v11, 5  ;;  %v449_v33 = vld [vmem:[#allocation2 + $0x18] sm:$0xf]  ;;  %v444_v37 = vsel %vm3113_vm6, %v369_v1, %v443_v18  ;;  %v1154_v4 = vld [vmem:[#allocation2 + $0x8] sm:$0xf]  ;;  %s238_s29 = scalar_lea.vmem %s3623_s5, %s2278_s22 }
  0x3d   : > { %v612_v27 = vrot.slane %v611_v6, 4  ;;  %v377_v30 = vor.u32 %v375_v49, %v374_v12  ;;  %v630_v35 = vrot.slane %v628_v17, 5  ;;  %v378_v36 = vrot.slane %v374_v12, 4  ;;  %v446_v38 = vld [vmem:[#allocation2 + $0x14] sm:$0x1] }
  0x3e   : > { %v625_v42 = vor.u32 %v624_v25, %v621_v28  ;;  %445 = vst [vmem:[#allocation2 + $0x10] sm:$0xf] %v444_v37  ;;  %v447_v43 = vsel %vm3025_vm3, %v370_v2, %v446_v38  ;;  %v452_v45 = vld [vmem:[#allocation2 + $0x1c] sm:$0x1]  ;;  %v2449_v7 = vld [vmem:[#allocation2 + $0x8] sm:$0xf] }
  0x3f   : > { %v617_v39 = vsel %vm3196_vm12, %v612_v27, %v616_v15  ;;  %v450_v44 = vsel %vm3113_vm6, %v377_v30, %v449_v33  ;;  %448 = vst [vmem:[#allocation2 + $0x14] sm:$0x1] %v447_v43  ;;  %v453_v46 = vsel %vm3025_vm3, %v378_v36, %v452_v45  ;;  %v1171_v19 = vshrl.u32 %v1154_v4, 16  ;;  %v2833_v33 = vld [vmem:[%s3621_s3 + $0x1a0] sm:$0xff]  ;;  %v2842_v36 = vld [vmem:[%s3621_s3 + $0x1e8] sm:$0xff] }
  0x40   : > { %819 = vmatpush.bf16.msrb.mxu1 %v2775_v60  ;;  %1368 = vmatpush.bf16.msrb.mxu0 %v2811_v61  ;;  %v626_v48 = vrot.slane %v625_v42, 4  ;;  %451 = vst [vmem:[#allocation2 + $0x18] sm:$0xf] %v450_v44  ;;  %v655_v50 = vunpack.c.l.b16 %v617_v39  ;;  %v1174_v52 = vshll.u32 %v1154_v4, 16  ;;  %v2843_v61 = vld [vmem:[%s3621_s3 + $0x1f0] sm:$0xff]  ;;  %v2822_v37 = vld [vmem:[%s3621_s3 + $0x168] sm:$0xff] }
  0x41   : > { %454 = vst [vmem:[#allocation2 + $0x1c] sm:$0x1] %v453_v46  ;;  %1919 = vmatpush.bf16.msrb.mxu3 %v2843_v61  ;;  %v3346_v43 = vld [vmem:[#allocation2 + $0xc] sm:$0x1]  ;;  %v847_v45 = vld [vmem:[#allocation2 + $0x20] sm:$0xe]  ;;  %1675 = vmatpush.bf16.msrb.mxu2 %v2833_v33 }
  0x42   : > { %v631_v31 = vsel %vm3196_vm12, %v626_v48, %v630_v35  ;;  %v1176_v48 = vrot.slane %v1174_v52, 5  ;;  %v2329_v52 = vld [vmem:[#allocation2] sm:$0xf] }
  0x43   : > { %v656_v51 = vunpack.c.l.b16 %v631_v31 }
  0x44   : > { %820 = vmatpush.bf16.msrb.mxu1 %v2774_v22  ;;  %1369 = vmatpush.bf16.msrb.mxu0 %v2810_v24  ;;  %v2823_v22 = vld [vmem:[%s3621_s3 + $0x170] sm:$0xff] }
  0x45   : > { %v660_v54 = vpack.c.b16 %v656_v51, %v655_v50  ;;  %v487_v14 = vld [vmem:[#allocation2 + $0x10] sm:$0xf]  ;;  %1920 = vmatpush.bf16.msrb.mxu3 %v2842_v36  ;;  %v3354_v50 = vld [vmem:[%s3621_s3 + $0x238] sm:$0xff] }
  0x46   : > { %v2797_v60 = vld [vmem:[#allocation2 + $0xc] sm:$0xf0]  ;;  %v511_v40 = vld [vmem:[#allocation2 + $0x14] sm:$0x1]  ;;  %v549_v55 = vshrl.u32 %v487_v14, 16  ;;  %v552_v58 = vshll.u32 %v487_v14, 16 }
  0x47   : > { %v845_v29 = vld [vmem:[#allocation2 + $0x10] sm:$0xe]  ;;  %v2450_v59 = vor.u32 %v2797_v60, %v2449_v7  ;;  %v488_v62 = vld [vmem:[#allocation2 + $0x18] sm:$0xf]  ;;  %v558_v63 = vshll.u32 %v511_v40, 16  ;;  %v880_v1 = vrot.slane %v511_v40, 5 }
  0x48   : > { %821 = vmatpush.bf16.msrb.mxu1 %v2773_v47  ;;  %1370 = vmatpush.bf16.msrb.mxu0 %v2809_v16  ;;  %v2377_v49 = vrot.slane %v845_v29, 9  ;;  %v846_v0 = vld [vmem:[#allocation2 + $0x18] sm:$0xe]  ;;  %v512_v2 = vld [vmem:[#allocation2 + $0x1c] sm:$0x1]  ;;  %v551_v3 = vrot.slane %v549_v55, 4 }
  0x49   : > { %736 = vmatmul.bf16.gmra.mxu1 %v660_v54  ;;  %v554_v6 = vrot.slane %v552_v58, 5  ;;  %v563_v10 = vshrl.u32 %v488_v62, 16  ;;  %v566_v11 = vshll.u32 %v488_v62, 16  ;;  %1125 = vmatmul.bf16.vlgmr.msra.gmra.mxu3 %v2450_v59  ;;  %v560_v12 = vrot.slane %v558_v63, 5  ;;  %v1156_v30 = vld [vmem:[#allocation2 + $0x10] sm:$0xf] }
  0x4a   : > { %v572_v15 = vshll.u32 %v512_v2, 16  ;;  %v881_v17 = vsel %vm3153_vm11, %v2377_v49, %v880_v1  ;;  %v2378_v18 = vrot.slane %v846_v0, 9  ;;  %v884_v25 = vrot.slane %v512_v2, 5  ;;  %v2832_v16 = vld [vmem:[%s3621_s3 + $0x198] sm:$0xff]  ;;  %v848_v7 = vld [vmem:[#allocation2 + $0x28] sm:$0xe] }
  0x4b   : > { %v555_v24 = vor.u32 %v554_v6, %v551_v3  ;;  %v565_v27 = vrot.slane %v563_v10, 4  ;;  %v568_v28 = vrot.slane %v566_v11, 5  ;;  %v921_v35 = vunpack.c.l.b16 %v881_v17  ;;  %v3358_v14 = vld [vmem:[#allocation2 + $0x14] sm:$0x1]  ;;  %v2769_v40 = vld [vmem:[#allocation2 + $0x4] sm:$0xf0]  ;;  %1676 = vmatpush.bf16.msrb.mxu2 %v2832_v16 }
  0x4c   : > { %1537 = vmatpush.bf16.msra.mxu1 %v2824_v57  ;;  %v574_v34 = vrot.slane %v572_v15, 5  ;;  %v885_v42 = vsel %vm3153_vm11, %v2378_v18, %v884_v25  ;;  %v1185_v44 = vshrl.u32 %v1156_v30, 16  ;;  %v1173_v47 = vrot.slane %v1171_v19, 4  ;;  %2092 = vmatpush.bf16.msra.mxu0 %v3354_v50  ;;  %v2453_v61 = vld [vmem:[#allocation2 + $0x18] sm:$0xf] }
  0x4d   : > { %v556_v38 = vrot.slane %v555_v24, 4  ;;  %v569_v39 = vor.u32 %v568_v28, %v565_v27  ;;  %v922_v46 = vunpack.c.l.b16 %v885_v42  ;;  %v1188_v57 = vshll.u32 %v1156_v30, 16  ;;  %v2798_v62 = vld [vmem:[#allocation2 + $0x1c] sm:$0xf0]  ;;  %v1158_v10 = vld [vmem:[#allocation2 + $0x18] sm:$0xf] }
  0x4e   : > { %v1187_v51 = vrot.slane %v1185_v44, 4  ;;  %v1180_v55 = vshll.u32 %v3346_v43, 16  ;;  %v2379_v58 = vrot.slane %v847_v45, 9  ;;  %v888_v59 = vrot.slane %v3202_v26, 5  ;;  %v1160_v15 = vld [vmem:[#allocation2 + $0x20] sm:$0xf] }
  0x4f   : > { %v561_v4 = vsel %vm3196_vm12, %v556_v38, %v560_v12  ;;  %v570_v31 = vrot.slane %v569_v39, 4  ;;  %v928_v19 = vpack.c.b16 %v922_v46, %v921_v35  ;;  %v1190_v60 = vrot.slane %v1188_v57, 5  ;;  %v2821_v24 = vld [vmem:[%s3621_s3 + $0x160] sm:$0xff]  ;;  %v2831_v27 = vld [vmem:[%s3621_s3 + $0x190] sm:$0xff]  ;;  %v2820_v42 = vld [vmem:[%s3621_s3 + $0x158] sm:$0xff] }
  0x50   : > { %1538 = vmatpush.bf16.msra.mxu1 %v2823_v22  ;;  %v651_v54 = vunpack.c.l.b16 %v561_v4  ;;  %v1177_v63 = vor.u32 %v1176_v48, %v1173_v47  ;;  %v2380_v0 = vrot.slane %v848_v7, 9  ;;  %v892_v1 = vrot.slane %v3224_v41, 5  ;;  %v2841_v41 = vld [vmem:[%s3621_s3 + $0x1e0] sm:$0xff]  ;;  %v3394_v47 = vld [vmem:[#allocation2 + $0x1c] sm:$0x1]  ;;  %1677 = vmatpush.bf16.msrb.mxu2 %v2831_v27  ;;  %v3403_v48 = vld [vmem:[%s3621_s3 + $0x228] sm:$0xff] }
  0x51   : > { %v575_v29 = vsel %vm3196_vm12, %v570_v31, %v574_v34  ;;  %996 = vmatmul.bf16.gmra.mxu2 %v928_v19  ;;  %v1191_v2 = vor.u32 %v1190_v60, %v1187_v51  ;;  %v1194_v3 = vshll.u32 %v3358_v14, 16  ;;  %v2330_v11 = vor.u32 %v2769_v40, %v2329_v52  ;;  %v3383_v34 = vld [vmem:[%s3621_s3 + $0x230] sm:$0xff]  ;;  %1921 = vmatpush.bf16.msrb.mxu3 %v2841_v41  ;;  %v326_v39 = vld [vmem:[#allocation2 + $0x40] sm:$0x1]  ;;  %v3408_v4 = vld [vmem:[#allocation2 + $0x24] sm:$0x1] }
  0x52   : > { %v652_v49 = vunpack.c.l.b16 %v575_v29  ;;  %v2454_v12 = vor.u32 %v2798_v62, %v2453_v61  ;;  %v1178_v17 = vrot.slane %v1177_v63, 4  ;;  %v1182_v26 = vrot.slane %v1180_v55, 5  ;;  %2093 = vmatpush.bf16.msra.mxu0 %v3383_v34  ;;  %v352_v60 = vld [vmem:[#allocation2 + $0x44] sm:$0x1]  ;;  %v849_v29 = vld [vmem:[#allocation2 + $0x30] sm:$0xe] }
  0x53   : > { %v889_v18 = vsel %vm3153_vm11, %v2379_v58, %v888_v59  ;;  %v893_v22 = vsel %vm3153_vm11, %v2380_v0, %v892_v1  ;;  %v1192_v28 = vrot.slane %v1191_v2, 4  ;;  %v1196_v25 = vrot.slane %v1194_v3, 5  ;;  %v850_v58 = vld [vmem:[#allocation2 + $0x38] sm:$0xe] }
  0x54   : > { %1539 = vmatpush.bf16.msra.mxu1 %v2822_v37  ;;  %v658_v6 = vpack.c.b16 %v652_v49, %v651_v54  ;;  %v1199_v30 = vshrl.u32 %v1158_v10, 16  ;;  %v1202_v33 = vshll.u32 %v1158_v10, 16  ;;  %v1213_v35 = vshrl.u32 %v1160_v15, 16  ;;  %v2840_v37 = vld [vmem:[%s3621_s3 + $0x1d8] sm:$0xff] }
  0x55   : > { %v1216_v36 = vshll.u32 %v1160_v15, 16  ;;  %v2868_v38 = vunpack.c.h.bf16 %v3058_v32  ;;  %v1183_v44 = vsel %vm3196_vm12, %v1178_v17, %v1182_v26  ;;  %v923_v45 = vunpack.c.l.b16 %v889_v18  ;;  %v2830_v32 = vld [vmem:[%s3621_s3 + $0x188] sm:$0xff]  ;;  %1922 = vmatpush.bf16.msrb.mxu3 %v2840_v37  ;;  %v2770_v10 = vld [vmem:[#allocation2 + $0x14] sm:$0xf0]  ;;  %v2799_v26 = vld [vmem:[#allocation2 + $0x2c] sm:$0xf0] }
  0x56   : > { %726 = vmatmul.bf16.gmra.mxu0 %v658_v6  ;;  %v924_v46 = vunpack.c.l.b16 %v893_v22  ;;  %v1197_v16 = vsel %vm3196_vm12, %v1192_v28, %v1196_v25  ;;  %v1201_v31 = vrot.slane %v1199_v30, 4  ;;  %v1204_v51 = vrot.slane %v1202_v33, 5  ;;  %1678 = vmatpush.bf16.msrb.mxu2 %v2830_v32  ;;  %v2333_v6 = vld [vmem:[#allocation2 + $0x10] sm:$0xf]  ;;  %v2457_v17 = vld [vmem:[#allocation2 + $0x28] sm:$0xf] }
  0x57   : > { %v267_v57 = vmul.f32 %v3009_v8, %v2868_v38  ;;  %v327_v7 = vsel %vm3025_vm3, 0, %v326_v39  ;;  %v1215_v54 = vrot.slane %v1213_v35, 4  ;;  %v1218_v19 = vrot.slane %v1216_v36, 5  ;;  %2094 = vmatpush.bf16.msra.mxu0 %v3403_v48  ;;  %v1162_v35 = vld [vmem:[#allocation2 + $0x28] sm:$0xf]  ;;  %v2839_v39 = vld [vmem:[%s3621_s3 + $0x1d0] sm:$0xff] }
  0x58   : > { %1540 = vmatpush.bf16.msra.mxu1 %v2821_v24  ;;  %328 = vst [vmem:[#allocation2 + $0x40] sm:$0x1] %v327_v7  ;;  %v1299_v8 = vunpack.c.l.b16 %v1183_v44  ;;  %v1300_v40 = vunpack.c.l.b16 %v1197_v16  ;;  %v929_v55 = vpack.c.b16 %v924_v46, %v923_v45  ;;  %v1205_v49 = vor.u32 %v1204_v51, %v1201_v31  ;;  %v1164_v36 = vld [vmem:[#allocation2 + $0x30] sm:$0xf]  ;;  %v2838_v31 = vld [vmem:[%s3621_s3 + $0x1c8] sm:$0xff] }
  0x59   : > { %822 = vmatmul.bf16.vlgmr.msrb.gmra.mxu1 %v2330_v11  ;;  %1130 = vmatmul.bf16.gmra.mxu3 %v2454_v12  ;;  %v279_v52 = vadd.f32 %v3014_v9, %v267_v57  ;;  %v1208_v61 = vshll.u32 %v3394_v47, 16  ;;  %v1222_v62 = vshll.u32 %v3408_v4, 16  ;;  %v2829_v9 = vld [vmem:[%s3621_s3 + $0x180] sm:$0xff]  ;;  %v353_v63 = vsel %vm3036_vm4, 0, %v352_v60  ;;  %v2848_v60 = vld [vmem:[%s3621_s3 + $0x218] sm:$0xff] }
  0x5a   : > { %v1219_v0 = vor.u32 %v1218_v19, %v1215_v54  ;;  %v2381_v1 = vrot.slane %v849_v29, 9  ;;  %v896_v2 = vrot.slane %v3285_v56, 5  ;;  %354 = vst [vmem:[#allocation2 + $0x44] sm:$0x1] %v353_v63  ;;  %v2382_v11 = vrot.slane %v850_v58, 9  ;;  %1679 = vmatpush.bf16.msrb.mxu2 %v2829_v9  ;;  %1923 = vmatpush.bf16.msrb.mxu3 %v2839_v39 }
  0x5b   : > { %v287_v59 = vmax.f32 %v279_v52, 0.0  ;;  %v900_v12 = vrot.slane %v3294_v5, 5  ;;  %v1307_v15 = vpack.c.b16 %v1300_v40, %v1299_v8  ;;  %v1206_v41 = vrot.slane %v1205_v49, 4  ;;  %v2818_v52 = vld [vmem:[%s3621_s3 + $0x148] sm:$0xff]  ;;  %v1709_v29 = vld [vmem:[#allocation2 + $0x10] sm:$0xf] }
  0x5c   : > { %1541 = vmatpush.bf16.msra.mxu1 %v2820_v42  ;;  %v1210_v20 = vrot.slane %v1208_v61, 5  ;;  %v1220_v24 = vrot.slane %v1219_v0, 4  ;;  %v1224_v27 = vrot.slane %v1222_v62, 5  ;;  %v897_v56 = vsel %vm3153_vm11, %v2381_v1, %v896_v2  ;;  %v2819_v42 = vld [vmem:[%s3621_s3 + $0x150] sm:$0xff]  ;;  %v1711_v8 = vld [vmem:[#allocation2 + $0x18] sm:$0xf] }
  0x5d   : > { %v295_v3 = vpack.c.bf16 %v287_v59, %v287_v59  ;;  %v2334_v25 = vor.u32 %v2770_v10, %v2333_v6  ;;  %v2458_v30 = vor.u32 %v2799_v26, %v2457_v17  ;;  %v901_v5 = vsel %vm3153_vm11, %v2382_v11, %v900_v12  ;;  %v3458_v59 = vld [vmem:[#allocation2 + $0x2c] sm:$0x1]  ;;  %v3460_v63 = vld [vmem:[#allocation2 + $0x34] sm:$0x1]  ;;  %v2771_v11 = vld [vmem:[#allocation2 + $0x24] sm:$0xf0] }
  0x5e   : > { %2903 = vmatpush.bf16.msra.mxu2 %v3354_v50  ;;  %v2849_v50 = vld [vmem:[%s3621_s3 + $0x220] sm:$0xff]  ;;  %v1211_v44 = vsel %vm3196_vm12, %v1206_v41, %v1210_v20  ;;  %v925_v45 = vunpack.c.l.b16 %v897_v56  ;;  %v1225_v46 = vsel %vm3196_vm12, %v1220_v24, %v1224_v27  ;;  %v926_v32 = vunpack.c.l.b16 %v901_v5  ;;  %1924 = vmatpush.bf16.msrb.mxu3 %v2838_v31  ;;  %v2461_v12 = vld [vmem:[#allocation2 + $0x38] sm:$0xf]  ;;  %v3465_v27 = vld [vmem:[#allocation2 + $0x14] sm:$0x1] }
  0x5f   : > { %v412_v18 = vshrl.u32 %v295_v3, 16  ;;  %v415_v22 = vshll.u32 %v295_v3, 16  ;;  %v479_v33 = vld [vmem:[#allocation2 + $0x40] sm:$0xf]  ;;  %v1227_v16 = vshrl.u32 %v1162_v35, 16  ;;  %v1230_v7 = vshll.u32 %v1162_v35, 16  ;;  %2095 = vmatpush.bf16.msra.mxu0 %v2849_v50 }
  0x60   : > { %1542 = vmatpush.bf16.msra.mxu1 %v2819_v42  ;;  %v1241_v54 = vshrl.u32 %v1164_v36, 16  ;;  %v1244_v19 = vshll.u32 %v1164_v36, 16  ;;  %v1301_v40 = vunpack.c.l.b16 %v1211_v44  ;;  %v930_v58 = vpack.c.b16 %v926_v32, %v925_v45  ;;  %v2337_v3 = vld [vmem:[#allocation2 + $0x20] sm:$0xf]  ;;  %v1166_v35 = vld [vmem:[#allocation2 + $0x38] sm:$0xf] }
  0x61   : > { %1001 = vmatmul.bf16.gmra.mxu2 %v929_v55  ;;  %v414_v28 = vrot.slane %v412_v18, 7  ;;  %v482_v51 = vld [vmem:[#allocation2 + $0x44] sm:$0x1]  ;;  %v1302_v55 = vunpack.c.l.b16 %v1225_v46  ;;  %v1229_v49 = vrot.slane %v1227_v16, 4  ;;  %v1232_v61 = vrot.slane %v1230_v7, 5  ;;  %v2846_v46 = vld [vmem:[%s3621_s3 + $0x208] sm:$0xff] }
  0x62   : > { %2904 = vmatpush.bf16.msra.mxu2 %v3383_v34  ;;  %v1243_v62 = vrot.slane %v1241_v54, 4  ;;  %v1246_v9 = vrot.slane %v1244_v19, 5  ;;  %v1726_v34 = vshrl.u32 %v1709_v29, 16  ;;  %v1729_v0 = vshll.u32 %v1709_v29, 16  ;;  %1925 = vmatpush.bf16.msrb.mxu3 %v2837_v13  ;;  %v2817_v42 = vld [vmem:[%s3621_s3 + $0x140] sm:$0xff] }
  0x63   : > { %v417_v37 = vor.u32 %v415_v22, %v414_v28  ;;  %v418_v38 = vrot.slane %v414_v28, 4  ;;  %2096 = vmatpush.bf16.msra.mxu0 %v2848_v60  ;;  %v1740_v1 = vshrl.u32 %v1711_v8, 16  ;;  %v1743_v2 = vshll.u32 %v1711_v8, 16  ;;  %v2617_v44 = vld [vmem:[#allocation2 + $0x10] sm:$0xf] }
  0x64   : > { %1543 = vmatpush.bf16.msra.mxu1 %v2818_v52  ;;  %v1236_v6 = vshll.u32 %v3458_v59, 16  ;;  %v1308_v10 = vpack.c.b16 %v1302_v55, %v1301_v40  ;;  %v1247_v17 = vor.u32 %v1246_v9, %v1243_v62  ;;  %v1250_v26 = vshll.u32 %v3460_v63, 16  ;;  %v1715_v7 = vld [vmem:[#allocation2 + $0x28] sm:$0xf]  ;;  %v2825_v54 = vld [vmem:[#allocation2 + $0x14] sm:$0xf0] }
  0x65   : > { %v480_v57 = vsel %vm3113_vm6, %v417_v37, %v479_v33  ;;  %v483_v21 = vsel %vm3025_vm3, %v418_v38, %v482_v51  ;;  %v1728_v22 = vrot.slane %v1726_v34, 4  ;;  %v1731_v41 = vrot.slane %v1729_v0, 5  ;;  %v1713_v51 = vld [vmem:[#allocation2 + $0x20] sm:$0xf] }
  0x66   : > { %1371 = vmatmul.bf16.vlgmr.msrb.gmra.mxu0 %v1307_v15  ;;  %481 = vst [vmem:[#allocation2 + $0x40] sm:$0xf] %v480_v57  ;;  %2905 = vmatpush.bf16.msra.mxu2 %v3403_v48  ;;  %v1233_v15 = vor.u32 %v1232_v61, %v1229_v49  ;;  %v1742_v20 = vrot.slane %v1740_v1, 4  ;;  %v1745_v24 = vrot.slane %v1743_v2, 5  ;;  %v3467_v48 = vld [vmem:[#allocation2 + $0x1c] sm:$0x1]  ;;  %v2338_v56 = vor.u32 %v2771_v11, %v2337_v3 }
  0x67   : > { %484 = vst [vmem:[#allocation2 + $0x44] sm:$0x1] %v483_v21  ;;  %v1238_v28 = vrot.slane %v1236_v6, 5  ;;  %v1248_v5 = vrot.slane %v1247_v17, 4  ;;  %v1252_v33 = vrot.slane %v1250_v26, 5  ;;  %v1732_v36 = vor.u32 %v1731_v41, %v1728_v22  ;;  %v2845_v40 = vld [vmem:[%s3621_s3 + $0x200] sm:$0xff] }
  0x68   : > { %v1735_v37 = vshll.u32 %v3465_v27, 16  ;;  %v1746_v38 = vor.u32 %v1745_v24, %v1742_v20  ;;  %v1749_v39 = vshll.u32 %v3467_v48, 16  ;;  %1544 = vmatpush.bf16.msra.mxu1 %v2817_v42  ;;  %v1255_v16 = vshrl.u32 %v1166_v35, 16  ;;  %v3491_v3 = vld [vmem:[#allocation2 + $0x3c] sm:$0x1] }
  0x69   : > { %827 = vmatmul.bf16.gmra.mxu1 %v2334_v25  ;;  %1135 = vmatmul.bf16.gmra.mxu3 %v2458_v30  ;;  %v1234_v30 = vrot.slane %v1233_v15, 4  ;;  %v1253_v57 = vsel %vm3196_vm12, %v1248_v5, %v1252_v33  ;;  %v1258_v31 = vshll.u32 %v1166_v35, 16  ;;  %v1733_v19 = vrot.slane %v1732_v36, 4  ;;  %v3495_v41 = vld [vmem:[#allocation2 + $0x24] sm:$0x1] }
  0x6a   : > { %2906 = vmatpush.bf16.msra.mxu2 %v2849_v50  ;;  %v2847_v50 = vld [vmem:[%s3621_s3 + $0x210] sm:$0xff]  ;;  %v1737_v52 = vrot.slane %v1735_v37, 5  ;;  %v1747_v21 = vrot.slane %v1746_v38, 4  ;;  %v1754_v55 = vshrl.u32 %v1713_v51, 16  ;;  %v1768_v13 = vshrl.u32 %v1715_v7, 16 }
  0x6b   : > { %2097 = vmatpush.bf16.msra.mxu0 %v2847_v50  ;;  %v1239_v32 = vsel %vm3196_vm12, %v1234_v30, %v1238_v28  ;;  %v1771_v49 = vshll.u32 %v1715_v7, 16  ;;  %v1304_v62 = vunpack.c.l.b16 %v1253_v57  ;;  %v2618_v9 = vor.u32 %v2825_v54, %v2617_v44  ;;  %v3497_v20 = vld [vmem:[#allocation2 + $0x2c] sm:$0x1]  ;;  %v2772_v28 = vld [vmem:[#allocation2 + $0x34] sm:$0xf0] }
  0x6c   : > { %v1303_v61 = vunpack.c.l.b16 %v1239_v32  ;;  %v1257_v34 = vrot.slane %v1255_v16, 4  ;;  %v1260_v0 = vrot.slane %v1258_v31, 5  ;;  %v1738_v1 = vsel %vm3196_vm12, %v1733_v19, %v1737_v52  ;;  %v1400_v35 = vld [vmem:[#allocation2 + $0x8] sm:$0xe]  ;;  %v1401_v36 = vld [vmem:[#allocation2 + $0x10] sm:$0xe] }
  0x6d   : > { %v2800_v18 = vld [vmem:[#allocation2 + $0x3c] sm:$0xf0]  ;;  %v1770_v17 = vrot.slane %v1768_v13, 4  ;;  %v1773_v26 = vrot.slane %v1771_v49, 5  ;;  %v1264_v30 = vshll.u32 %v3491_v3, 16  ;;  %v1763_v38 = vshll.u32 %v3495_v41, 16 }
  0x6e   : > { %v2462_v25 = vor.u32 %v2800_v18, %v2461_v12  ;;  %2907 = vmatpush.bf16.msra.mxu2 %v2848_v60  ;;  %v1168_v45 = vld [vmem:[#allocation2 + $0x40] sm:$0xf]  ;;  %v1751_v60 = vrot.slane %v1749_v39, 5  ;;  %v3493_v11 = vld [vmem:[#allocation2 + $0x44] sm:$0x1]  ;;  %v1756_v12 = vrot.slane %v1754_v55, 4  ;;  %v1854_v18 = vunpack.c.l.b16 %v1738_v1 }
  0x6f   : > { %v1269_v29 = vshrl.u32 %v1168_v45, 16  ;;  %v1272_v8 = vshll.u32 %v1168_v45, 16  ;;  %2098 = vmatpush.bf16.msra.mxu0 %v2846_v46  ;;  %v1309_v24 = vpack.c.b16 %v1304_v62, %v1303_v61  ;;  %v1278_v33 = vshll.u32 %v3493_v11, 16 }
  0x70   : > { %v1752_v2 = vsel %vm3196_vm12, %v1747_v21, %v1751_v60  ;;  %v1774_v39 = vor.u32 %v1773_v26, %v1770_v17  ;;  %v1777_v42 = vshll.u32 %v3497_v20, 16  ;;  %v1426_v45 = vrot.slane %v3346_v43, 5  ;;  %v1717_v60 = vld [vmem:[#allocation2 + $0x30] sm:$0xf]  ;;  %v1956_v26 = vld [vmem:[#allocation2 + $0x18] sm:$0xe] }
  0x71   : > { %1006 = vmatmul.bf16.gmra.mxu2 %v930_v58  ;;  %v1757_v58 = vshll.u32 %v1713_v51, 16  ;;  %v1271_v6 = vrot.slane %v1269_v29, 4  ;;  %v1855_v22 = vunpack.c.l.b16 %v1752_v2  ;;  %v1266_v57 = vrot.slane %v1264_v30, 5  ;;  %v1719_v29 = vld [vmem:[#allocation2 + $0x38] sm:$0xf] }
  0x72   : > { %2908 = vmatpush.bf16.msra.mxu2 %v2847_v50  ;;  %v1280_v31 = vrot.slane %v1278_v33, 5  ;;  %v2543_v51 = vrot.slane %v1400_v35, 9  ;;  %v2544_v7 = vrot.slane %v1401_v36, 9  ;;  %v1765_v19 = vrot.slane %v1763_v38, 5  ;;  %v1955_v17 = vld [vmem:[#allocation2 + $0x10] sm:$0xe] }
  0x73   : > { %2099 = vmatpush.bf16.msra.mxu0 %v2845_v40  ;;  %v1759_v15 = vrot.slane %v1757_v58, 5  ;;  %v1862_v44 = vpack.c.b16 %v1855_v22, %v1854_v18  ;;  %v1775_v52 = vrot.slane %v1774_v39, 4  ;;  %v1779_v21 = vrot.slane %v1777_v42, 5  ;;  %v3519_v30 = vld [vmem:[#allocation2 + $0x3c] sm:$0x1] }
  0x74   : > { %v1427_v55 = vsel %vm3153_vm11, %v2543_v51, %v1426_v45  ;;  %v1782_v61 = vshrl.u32 %v1717_v60, 16  ;;  %v1785_v62 = vshll.u32 %v1717_v60, 16  ;;  %v1985_v33 = vrot.slane %v3467_v48, 5  ;;  %v1402_v39 = vld [vmem:[#allocation2 + $0x18] sm:$0xe] }
  0x75   : > { %v1760_v37 = vor.u32 %v1759_v15, %v1756_v12  ;;  %v1780_v49 = vsel %vm3196_vm12, %v1775_v52, %v1779_v21  ;;  %v2711_v35 = vrot.slane %v1955_v17, 9  ;;  %v2712_v36 = vrot.slane %v1956_v26, 9  ;;  %v1403_v42 = vld [vmem:[#allocation2 + $0x20] sm:$0xe]  ;;  %v2625_v48 = vld [vmem:[#allocation2 + $0x30] sm:$0xf] }
  0x76   : > { %1376 = vmatmul.bf16.gmra.mxu0 %v1308_v10  ;;  %v1274_v10 = vrot.slane %v1272_v8, 5  ;;  %2909 = vmatpush.bf16.msra.mxu2 %v2846_v46  ;;  %v1430_v46 = vrot.slane %v3358_v14, 5  ;;  %v2621_v8 = vld [vmem:[#allocation2 + $0x20] sm:$0xf]  ;;  %v1857_v15 = vunpack.c.l.b16 %v1780_v49  ;;  %v1784_v18 = vrot.slane %v1782_v61, 4 }
  0x77   : > { %v1761_v54 = vrot.slane %v1760_v37, 4  ;;  %v1787_v22 = vrot.slane %v1785_v62, 5  ;;  %v1438_v51 = vrot.slane %v3408_v4, 5  ;;  %v1721_v60 = vld [vmem:[#allocation2 + $0x40] sm:$0xf] }
  0x78   : > { %v1275_v5 = vor.u32 %v1274_v10, %v1271_v6  ;;  %v1431_v58 = vsel %vm3153_vm11, %v2544_v7, %v1430_v46  ;;  %v1473_v6 = vunpack.c.l.b16 %v1427_v55  ;;  %v1805_v46 = vshll.u32 %v3519_v30, 16  ;;  %v2827_v7 = vld [vmem:[#allocation2 + $0x34] sm:$0xf0]  ;;  %v1722_v26 = vld [vmem:[#allocation2 + $0x44] sm:$0x1] }
  0x79   : > { %832 = vmatmul.bf16.gmra.mxu1 %v2338_v56  ;;  %1140 = vmatmul.bf16.gmra.mxu3 %v2462_v25  ;;  %v2341_v56 = vld [vmem:[#allocation2 + $0x30] sm:$0xf]  ;;  %v1261_v25 = vor.u32 %v1260_v0, %v1257_v34  ;;  %v1766_v13 = vsel %vm3196_vm12, %v1761_v54, %v1765_v19  ;;  %v1799_v34 = vshll.u32 %v1719_v29, 16  ;;  %v1474_v10 = vunpack.c.l.b16 %v1431_v58 }
  0x7a   : > { %2910 = vmatpush.bf16.msra.mxu2 %v2845_v40  ;;  %v2342_v50 = vor.u32 %v2772_v28, %v2341_v56  ;;  %v1276_v16 = vrot.slane %v1275_v5, 4  ;;  %v2826_v40 = vld [vmem:[#allocation2 + $0x24] sm:$0xf0]  ;;  %v1856_v12 = vunpack.c.l.b16 %v1766_v13  ;;  %v1981_v5 = vrot.slane %v3465_v27, 5 }
  0x7b   : > { %v1262_v32 = vrot.slane %v1261_v25, 4  ;;  %v2622_v2 = vor.u32 %v2826_v40, %v2621_v8  ;;  %v1801_v56 = vrot.slane %v1799_v34, 5  ;;  %v3517_v25 = vld [vmem:[#allocation2 + $0x34] sm:$0x1]  ;;  %v1481_v37 = vpack.c.b16 %v1474_v10, %v1473_v6  ;;  %v1958_v6 = vld [vmem:[#allocation2 + $0x28] sm:$0xe] }
  0x7c   : > { %v1281_v14 = vsel %vm3196_vm12, %v1276_v16, %v1280_v31  ;;  %v1863_v38 = vpack.c.b16 %v1857_v15, %v1856_v12  ;;  %v1986_v27 = vsel %vm3153_vm11, %v2712_v36, %v1985_v33  ;;  %v1434_v16 = vrot.slane %v3394_v47, 5  ;;  %v1405_v36 = vld [vmem:[#allocation2 + $0x30] sm:$0xe] }
  0x7d   : > { %v1267_v43 = vsel %vm3196_vm12, %v1262_v32, %v1266_v57  ;;  %v1306_v1 = vunpack.c.l.b16 %v1281_v14  ;;  %v1982_v32 = vsel %vm3153_vm11, %v2711_v35, %v1981_v5  ;;  %v2545_v57 = vrot.slane %v1402_v39, 9  ;;  %v1404_v35 = vld [vmem:[#allocation2 + $0x28] sm:$0xe] }
  0x7e   : > { %v1305_v0 = vunpack.c.l.b16 %v1267_v43  ;;  %v2546_v31 = vrot.slane %v1403_v42, 9  ;;  %v1807_v21 = vrot.slane %v1805_v46, 5  ;;  %v2028_v43 = vunpack.c.l.b16 %v1982_v32 }
  0x7f   : > { %v2029_v14 = vunpack.c.l.b16 %v1986_v27  ;;  %v2626_v8 = vor.u32 %v2827_v7, %v2625_v48  ;;  %v1435_v40 = vsel %vm3153_vm11, %v2545_v57, %v1434_v16  ;;  %v1810_v58 = vshrl.u32 %v1721_v60, 16  ;;  %v2828_v27 = vld [vmem:[#allocation2 + $0x44] sm:$0xf0] }
  0x80   : > { %v1310_v28 = vpack.c.b16 %v1306_v1, %v1305_v0  ;;  %v1439_v47 = vsel %vm3153_vm11, %v2546_v31, %v1438_v51  ;;  %v1813_v13 = vshll.u32 %v1721_v60, 16  ;;  %v2548_v46 = vrot.slane %v1405_v36, 9  ;;  %v1962_v60 = vld [vmem:[#allocation2 + $0x48] sm:$0xe] }
  0x81   : > { %1680 = vmatmul.bf16.vlgmr.msrb.gmra.mxu2 %v2618_v9  ;;  %v1796_v9 = vshrl.u32 %v1719_v29, 16  ;;  %v1723_v29 = vld [vmem:[#allocation2 + $0x48] sm:$0xf]  ;;  %v2036_v62 = vpack.c.b16 %v2029_v14, %v2028_v43  ;;  %v1476_v34 = vunpack.c.l.b16 %v1439_v47  ;;  %v1812_v10 = vrot.slane %v1810_v58, 4 }
  0x82   : > { %v1824_v49 = vshrl.u32 %v1723_v29, 16  ;;  %v1827_v61 = vshll.u32 %v1723_v29, 16  ;;  %v1815_v12 = vrot.slane %v1813_v13, 5  ;;  %v1446_v32 = vrot.slane %v3460_v63, 5 }
  0x83   : > { %v2005_v47 = vrot.slane %v1722_v26, 5  ;;  %v2718_v13 = vrot.slane %v1962_v60, 9  ;;  %v1997_v23 = vrot.slane %v3517_v25, 5 }
  0x84   : > { %v1826_v15 = vrot.slane %v1824_v49, 4  ;;  %v1829_v17 = vrot.slane %v1827_v61, 5  ;;  %v1960_v49 = vld [vmem:[#allocation2 + $0x38] sm:$0xe] }
  0x86   : > { %1381 = vmatmul.bf16.gmra.mxu0 %v1309_v24  ;;  %v1798_v24 = vrot.slane %v1796_v9, 4  ;;  %v1475_v9 = vunpack.c.l.b16 %v1435_v40  ;;  %v1830_v39 = vor.u32 %v1829_v17, %v1826_v15  ;;  %v1450_v17 = vrot.slane %v3491_v3, 5 }
  0x88   : > { %v1802_v45 = vor.u32 %v1801_v56, %v1798_v24  ;;  %v1989_v24 = vrot.slane %v3495_v41, 5  ;;  %v2714_v56 = vrot.slane %v1958_v6, 9  ;;  %v1482_v5 = vpack.c.b16 %v1476_v34, %v1475_v9  ;;  %v2629_v41 = vld [vmem:[#allocation2 + $0x40] sm:$0xf] }
  0x89   : > { %837 = vmatmul.bf16.gmra.mxu1 %v2342_v50  ;;  %1926 = vmatmul.bf16.vlgmr.msrb.gmra.mxu3 %v1862_v44  ;;  %v1788_v50 = vor.u32 %v1787_v22, %v1784_v18  ;;  %v1791_v44 = vshll.u32 %v3517_v25, 16  ;;  %v1724_v18 = vld [vmem:[#allocation2 + $0x4c] sm:$0x1]  ;;  %v1831_v16 = vrot.slane %v1830_v39, 4 }
  0x8a   : > { %v1803_v52 = vrot.slane %v1802_v45, 4  ;;  %v1833_v42 = vshll.u32 %v1724_v18, 16  ;;  %v2547_v45 = vrot.slane %v1404_v35, 9  ;;  %v2009_v58 = vrot.slane %v1724_v18, 5 }
  0x8b   : > { %v1789_v54 = vrot.slane %v1788_v50, 4  ;;  %v1793_v19 = vrot.slane %v1791_v44, 5 }
  0x8c   : > { %v1808_v55 = vsel %vm3196_vm12, %v1803_v52, %v1807_v21  ;;  %v1835_v31 = vrot.slane %v1833_v42, 5  ;;  %v1447_v52 = vsel %vm3153_vm11, %v2548_v46, %v1446_v32  ;;  %v1961_v21 = vld [vmem:[#allocation2 + $0x40] sm:$0xe]  ;;  %v2010_v6 = vsel %vm3153_vm11, %v2718_v13, %v2009_v58 }
  0x8d   : > { %v1794_v4 = vsel %vm3196_vm12, %v1789_v54, %v1793_v19  ;;  %v1859_v1 = vunpack.c.l.b16 %v1808_v55  ;;  %v2630_v54 = vor.u32 %v2828_v27, %v2629_v41  ;;  %v1478_v43 = vunpack.c.l.b16 %v1447_v52 }
  0x8e   : > { %v1858_v0 = vunpack.c.l.b16 %v1794_v4  ;;  %v1836_v63 = vsel %vm3196_vm12, %v1831_v16, %v1835_v31  ;;  %v1959_v4 = vld [vmem:[#allocation2 + $0x30] sm:$0xe]  ;;  %v2717_v55 = vrot.slane %v1961_v21, 9 }
  0x8f   : > { %v2715_v9 = vrot.slane %v1959_v4, 9 }
  0x90   : > { %v1864_v33 = vpack.c.b16 %v1859_v1, %v1858_v0  ;;  %v2006_v0 = vsel %vm3153_vm11, %v2717_v55, %v2005_v47  ;;  %v2716_v1 = vrot.slane %v1960_v49, 9 }
  0x91   : > { %1685 = vmatmul.bf16.gmra.mxu2 %v2622_v2  ;;  %v1957_v2 = vld [vmem:[#allocation2 + $0x20] sm:$0xe]  ;;  %v1998_v15 = vsel %vm3153_vm11, %v2715_v9, %v1997_v23  ;;  %v2034_v25 = vunpack.c.l.b16 %v2006_v0 }
  0x92   : > { %v2713_v22 = vrot.slane %v1957_v2, 9  ;;  %v2001_v2 = vrot.slane %v3519_v30, 5 }
  0x94   : > { %v1990_v50 = vsel %vm3153_vm11, %v2713_v22, %v1989_v24  ;;  %v1454_v24 = vrot.slane %v3493_v11, 5  ;;  %v2002_v30 = vsel %vm3153_vm11, %v2716_v1, %v2001_v2 }
  0x95   : > { %v2030_v51 = vunpack.c.l.b16 %v1990_v50 }
  0x96   : > { %1386 = vmatmul.bf16.gmra.mxu0 %v1310_v28  ;;  %v1993_v28 = vrot.slane %v3497_v20, 5  ;;  %v1442_v20 = vrot.slane %v3458_v59, 5 }
  0x98   : > { %v1994_v44 = vsel %vm3153_vm11, %v2714_v56, %v1993_v28  ;;  %v1443_v19 = vsel %vm3153_vm11, %v2547_v45, %v1442_v20  ;;  %v2032_v56 = vunpack.c.l.b16 %v1998_v15 }
  0x99   : > { %1545 = vmatmul.bf16.vlgmr.msra.gmra.mxu1 %v1481_v37  ;;  %1931 = vmatmul.bf16.gmra.mxu3 %v1863_v38  ;;  %v1816_v37 = vor.u32 %v1815_v12, %v1812_v10  ;;  %v1819_v38 = vshll.u32 %v1722_v26, 16  ;;  %v2031_v7 = vunpack.c.l.b16 %v1994_v44  ;;  %v1477_v29 = vunpack.c.l.b16 %v1443_v19  ;;  %v1406_v10 = vld [vmem:[#allocation2 + $0x38] sm:$0xe]  ;;  %v1407_v12 = vld [vmem:[#allocation2 + $0x40] sm:$0xe] }
  0x9a   : > { %v2035_v26 = vunpack.c.l.b16 %v2010_v6  ;;  %v2549_v18 = vrot.slane %v1406_v10, 9  ;;  %v2550_v22 = vrot.slane %v1407_v12, 9 }
  0x9b   : > { %v1817_v48 = vrot.slane %v1816_v37, 4  ;;  %v1821_v57 = vrot.slane %v1819_v38, 5  ;;  %v2037_v40 = vpack.c.b16 %v2031_v7, %v2030_v51  ;;  %v1483_v61 = vpack.c.b16 %v1478_v43, %v1477_v29 }
  0x9c   : > { %v1451_v35 = vsel %vm3153_vm11, %v2549_v18, %v1450_v17  ;;  %v1455_v36 = vsel %vm3153_vm11, %v2550_v22, %v1454_v24 }
  0x9d   : > { %v1822_v59 = vsel %vm3196_vm12, %v1817_v48, %v1821_v57  ;;  %v1479_v38 = vunpack.c.l.b16 %v1451_v35  ;;  %v1480_v39 = vunpack.c.l.b16 %v1455_v36 }
  0x9e   : > { %v1860_v14 = vunpack.c.l.b16 %v1822_v59 }
  0x9f   : > { %v1484_v11 = vpack.c.b16 %v1480_v39, %v1479_v38 }
  0xa1   : > { %1690 = vmatmul.bf16.gmra.mxu2 %v2626_v8  ;;  %v1861_v8 = vunpack.c.l.b16 %v1836_v63 }
  0xa6   : > { %2100 = vmatmul.bf16.vlgmr.msra.gmra.mxu0 %v2036_v62  ;;  %v1865_v62 = vpack.c.b16 %v1861_v8, %v1860_v14 }
  0xa9   : > { %1550 = vmatmul.bf16.gmra.mxu1 %v1482_v5  ;;  %1936 = vmatmul.bf16.gmra.mxu3 %v1864_v33  ;;  %v2033_v5 = vunpack.c.l.b16 %v2002_v30  ;;  %v2039_v33 = vpack.c.b16 %v2035_v26, %v2034_v25 }
  0xab   : > { %v2038_v42 = vpack.c.b16 %v2033_v5, %v2032_v56 }
  0xb1   : > { %1695 = vmatmul.bf16.gmra.mxu2 %v2630_v54 }
  0xb6   : > { %2105 = vmatmul.bf16.gmra.mxu0 %v2037_v40  ;;  %v3556_v34 = vpop.f32.mrf.mxu1 }
  0xb8   : > { %v722_v37 = vpop.f32.mrf.mxu0 }
  0xb9   : > { %1555 = vmatmul.bf16.gmra.mxu1 %v1483_v61  ;;  %1941 = vmatmul.bf16.gmra.mxu3 %v1865_v62 }
  0xbc   : > { %v992_v3 = vpop.f32.mrf.mxu2 }
  0xbe   : > { %v734_v28 = vpop.f32.mrf.mxu1 }
  0xc0   : > { %v724_v44 = vpop.f32.mrf.mxu0 }
  0xc1   : > { %2115 = vmatmul.bf16.vlgmr.msra.gmra.mxu2 %v2039_v33 }
  0xc4   : > { %v994_v41 = vpop.f32.mrf.mxu2 }
  0xc6   : > { %2110 = vmatmul.bf16.gmra.mxu0 %v2038_v42  ;;  %v737_v50 = vpop.f32.mrf.mxu1 }
  0xc9   : > { %1560 = vmatmul.bf16.gmra.mxu1 %v1484_v11 }
  0xcc   : > { %v1126_v45 = vpop.f32.mrf.mxu3 }
  0xce   : > { %v739_v20 = vpop.f32.mrf.mxu1 }
  0xd3   : > { %v727_v46 = vpop.f32.mrf.mxu0 }
  0xd4   : > { %v1128_v32 = vpop.f32.mrf.mxu3  ;;  %v997_v27 = vpop.f32.mrf.mxu2 }
  0xd6   : > { %v823_v48 = vpop.f32.mrf.mxu1 }
  0xd7   : > { %v824_v53 = vadd.f32 %v823_v48, %v722_v37 }
  0xd9   : > { %v1012_v57 = vadd.f32 %v992_v3, %v824_v53 }
  0xdb   : > { %v729_v16 = vpop.f32.mrf.mxu0  ;;  %v1146_v31 = vadd.f32 %v1126_v45, %v1012_v57 }
  0xdc   : > { %v1131_v51 = vpop.f32.mrf.mxu3  ;;  %v999_v7 = vpop.f32.mrf.mxu2 }
  0xde   : > { %v825_v54 = vpop.f32.mrf.mxu1 }
  0xdf   : > { %v826_v19 = vadd.f32 %v825_v54, %v724_v44 }
  0xe1   : > { %v1013_v52 = vadd.f32 %v994_v41, %v826_v19 }
  0xe3   : > { %v1372_v59 = vpop.f32.mrf.mxu0  ;;  %v1147_v11 = vadd.f32 %v1128_v32, %v1013_v52 }
  0xe4   : > { %v1392_v63 = vadd.f32 %v1372_v59, %v1146_v31  ;;  %v1133_v21 = vpop.f32.mrf.mxu3  ;;  %v1002_v60 = vpop.f32.mrf.mxu2 }
  0xe6   : > { %v828_v29 = vpop.f32.mrf.mxu1 }
  0xe7   : > { %v829_v43 = vadd.f32 %v828_v29, %v727_v46 }
  0xe9   : > { %v1014_v14 = vadd.f32 %v997_v27, %v829_v43 }
  0xeb   : > { %v1374_v8 = vpop.f32.mrf.mxu0  ;;  %v1148_v40 = vadd.f32 %v1131_v51, %v1014_v14 }
  0xec   : > { %v1136_v47 = vpop.f32.mrf.mxu3  ;;  %v1004_v4 = vpop.f32.mrf.mxu2  ;;  %v1393_v45 = vadd.f32 %v1374_v8, %v1147_v11 }
  0xee   : > { %v830_v55 = vpop.f32.mrf.mxu1 }
  0xef   : > { %v831_v58 = vadd.f32 %v830_v55, %v729_v16 }
  0xf1   : > { %v1015_v13 = vadd.f32 %v999_v7, %v831_v58 }
  0xf3   : > { %v1377_v49 = vpop.f32.mrf.mxu0  ;;  %v1149_v19 = vadd.f32 %v1133_v21, %v1015_v13 }
  0xf4   : > { %v1394_v61 = vadd.f32 %v1377_v49, %v1148_v40  ;;  %v3573_v62 = vpop.f32.mrf.mxu3  ;;  %v1007_v9 = vpop.f32.mrf.mxu2 }
  0xf6   : > { %v833_v23 = vpop.f32.mrf.mxu1 }
  0xf7   : > { %v834_v0 = vadd.f32 %v833_v23, %v3556_v34 }
  0xf9   : > { %v1016_v1 = vadd.f32 %v1002_v60, %v834_v0 }
  0xfb   : > { %v1379_v2 = vpop.f32.mrf.mxu0  ;;  %v1150_v6 = vadd.f32 %v1136_v47, %v1016_v1 }
  0xfc   : > { %v3576_v10 = vpop.f32.mrf.mxu3  ;;  %v1009_v12 = vpop.f32.mrf.mxu2  ;;  %v1395_v43 = vadd.f32 %v1379_v2, %v1149_v19 }
  0xfe   : > { %v835_v15 = vpop.f32.mrf.mxu1 }
  0xff   : > { %v836_v25 = vadd.f32 %v835_v15, %v734_v28 }
 0x101   : > { %v3578_v17 = vadd.f32 %v1004_v4, %v836_v25 }
 0x103   : > { %v1382_v26 = vpop.f32.mrf.mxu0  ;;  %v1151_v25 = vadd.f32 %v3573_v62, %v3578_v17 }
 0x104   : > { %v1396_v18 = vadd.f32 %v1382_v26, %v1150_v6  ;;  %v3580_v22 = vpop.f32.mrf.mxu3  ;;  %v1681_v24 = vpop.f32.mrf.mxu2 }
 0x106   : > { %v838_v30 = vpop.f32.mrf.mxu1 }
 0x107   : > { %v839_v56 = vadd.f32 %v838_v30, %v737_v50 }
 0x109   : > { %v3582_v5 = vadd.f32 %v1007_v9, %v839_v56 }
 0x10b   : > { %v1384_v34 = vpop.f32.mrf.mxu0 }
 0x10c   : > { %v1927_v33 = vpop.f32.mrf.mxu3  ;;  %v1683_v35 = vpop.f32.mrf.mxu2  ;;  %v1397_v56 = vadd.f32 %v1384_v34, %v1151_v25 }
 0x10e   : > { %v840_v36 = vpop.f32.mrf.mxu1 }
 0x10f   : > { %v841_v37 = vadd.f32 %v840_v36, %v739_v20 }
 0x111   : > { %v3584_v3 = vadd.f32 %v1009_v12, %v841_v37 }
 0x113   : > { %v3586_v38 = vpop.f32.mrf.mxu0 }
 0x114   : > { %v1686_v28 = vpop.f32.mrf.mxu2  ;;  %v1929_v42 = vpop.f32.mrf.mxu3 }
 0x116   : > { %v1546_v39 = vpop.f32.mrf.mxu1 }
 0x117   : > { %v1566_v50 = vadd.f32 %v1546_v39, %v1392_v63 }
 0x119   : > { %v1701_v53 = vadd.f32 %v1681_v24, %v1566_v50 }
 0x11b   : > { %v3588_v44 = vpop.f32.mrf.mxu0  ;;  %v1947_v31 = vadd.f32 %v1927_v33, %v1701_v53 }
 0x11c   : > { %v1688_v41 = vpop.f32.mrf.mxu2  ;;  %v1932_v48 = vpop.f32.mrf.mxu3 }
 0x11e   : > { %v1548_v46 = vpop.f32.mrf.mxu1 }
 0x11f   : > { %v1567_v27 = vadd.f32 %v1548_v46, %v1393_v45 }
 0x121   : > { %v1702_v20 = vadd.f32 %v1683_v35, %v1567_v27 }
 0x123   : > { %v2101_v57 = vpop.f32.mrf.mxu0  ;;  %v1948_v7 = vadd.f32 %v1929_v42, %v1702_v20 }
 0x124   : > { %v1691_v16 = vpop.f32.mrf.mxu2  ;;  %v2121_v59 = vadd.f32 %v2101_v57, %v1947_v31  ;;  %v1934_v32 = vpop.f32.mrf.mxu3 }
 0x126   : > { %v1551_v51 = vpop.f32.mrf.mxu1  ;;  %v2158_v14 = vmul.f32 %v2121_v59, %v2121_v59 }
 0x127   : > { %v1568_v54 = vadd.f32 %v1551_v51, %v1394_v61 }
 0x129   : > { %v1703_v29 = vadd.f32 %v1686_v28, %v1568_v54 }
 0x12b   : > { %v2103_v52 = vpop.f32.mrf.mxu0  ;;  %v1949_v55 = vadd.f32 %v1932_v48, %v1703_v29 }
 0x12c   : > { %v2122_v60 = vadd.f32 %v2103_v52, %v1948_v7  ;;  %v1693_v63 = vpop.f32.mrf.mxu2  ;;  %v1937_v9 = vpop.f32.mrf.mxu3 }
 0x12e   : > { %v2872_v8 = vpack.c.bf16 %v2122_v60, %v2121_v59  ;;  %v2145_v40 = vadd.f32 %v2122_v60, %v2121_v59  ;;  %v2159_v47 = vmul.f32 %v2122_v60, %v2122_v60  ;;  %v1553_v4 = vpop.f32.mrf.mxu1 }
 0x12f   : > { %v1569_v58 = vadd.f32 %v1553_v4, %v1395_v43 }
 0x130   : > { %2873 = vst [vmem:[%s3595_s27] sm:$0xff] %v2872_v8   ;;  %v2166_v21 = vadd.f32 %v2159_v47, %v2158_v14 }
 0x131   : > { %v1704_v61 = vadd.f32 %v1688_v41, %v1569_v58 }
 0x133   : > { %v2106_v13 = vpop.f32.mrf.mxu0  ;;  %v1950_v12 = vadd.f32 %v1934_v32, %v1704_v61 }
 0x134   : > { %v2123_v49 = vadd.f32 %v2106_v13, %v1949_v55  ;;  %v1696_v1 = vpop.f32.mrf.mxu2  ;;  %v1939_v37 = vpop.f32.mrf.mxu3 }
 0x136   : > { %v2146_v23 = vadd.f32 %v2145_v40, %v2123_v49  ;;  %v2160_v0 = vmul.f32 %v2123_v49, %v2123_v49  ;;  %v1556_v2 = vpop.f32.mrf.mxu1 }
 0x137   : > { %v1570_v15 = vadd.f32 %v1556_v2, %v1396_v18  ;;  %v1152_v18 = vadd.f32 %v3576_v10, %v3582_v5 }
 0x138   : > { %v2167_v6 = vadd.f32 %v2166_v21, %v2160_v0 }
 0x139   : > { %v1705_v30 = vadd.f32 %v1691_v16, %v1570_v15  ;;  %v1398_v17 = vadd.f32 %v3586_v38, %v1152_v18  ;;  %v1153_v16 = vadd.f32 %v3580_v22, %v3584_v3 }
 0x13b   : > { %v2108_v26 = vpop.f32.mrf.mxu0  ;;  %v1951_v11 = vadd.f32 %v1937_v9, %v1705_v30  ;;  %v1399_v54 = vadd.f32 %v3588_v44, %v1153_v16 }
 0x13c   : > { %v2124_v24 = vadd.f32 %v2108_v26, %v1950_v12  ;;  %v1698_v42 = vpop.f32.mrf.mxu2  ;;  %v1942_v57 = vpop.f32.mrf.mxu3 }
 0x13e   : > { %v2877_v33 = vpack.c.bf16 %v2124_v24, %v2123_v49  ;;  %v2147_v35 = vadd.f32 %v2146_v23, %v2124_v24  ;;  %v2161_v36 = vmul.f32 %v2124_v24, %v2124_v24  ;;  %v1558_v28 = vpop.f32.mrf.mxu1 }
 0x13f   : > { %v1571_v41 = vadd.f32 %v1558_v28, %v1397_v56 }
 0x140   : > { %2892 = vst [vmem:[%s3595_s27 + $0x8] sm:$0xff] %v2877_v33   ;;  %v2168_v39 = vadd.f32 %v2167_v6, %v2161_v36 }
 0x141   : > { %v1706_v62 = vadd.f32 %v1693_v63, %v1571_v41 }
 0x143   : > { %v2111_v45 = vpop.f32.mrf.mxu0  ;;  %v1952_v20 = vadd.f32 %v1939_v37, %v1706_v62 }
 0x144   : > { %v2125_v50 = vadd.f32 %v2111_v45, %v1951_v11  ;;  %v2116_v51 = vpop.f32.mrf.mxu2  ;;  %v1944_v14 = vpop.f32.mrf.mxu3 }
 0x146   : > { %v2148_v46 = vadd.f32 %v2147_v35, %v2125_v50  ;;  %v2162_v34 = vmul.f32 %v2125_v50, %v2125_v50  ;;  %v1561_v27 = vpop.f32.mrf.mxu1 }
 0x147   : > { %v1572_v48 = vadd.f32 %v1561_v27, %v1398_v17 }
 0x148   : > { %v2169_v53 = vadd.f32 %v2168_v39, %v2162_v34 }
 0x149   : > { %v1707_v31 = vadd.f32 %v1696_v1, %v1572_v48 }
 0x14b   : > { %v2113_v7 = vpop.f32.mrf.mxu0  ;;  %v1953_v10 = vadd.f32 %v1942_v57, %v1707_v31 }
 0x14c   : > { %v2126_v5 = vadd.f32 %v2113_v7, %v1952_v20  ;;  %v2118_v40 = vpop.f32.mrf.mxu2 }
 0x14d   : > { %v2127_v19 = vadd.f32 %v2116_v51, %v1953_v10 }
 0x14e   : > { %v2882_v38 = vpack.c.bf16 %v2126_v5, %v2125_v50  ;;  %v2149_v59 = vadd.f32 %v2148_v46, %v2126_v5  ;;  %v2163_v32 = vmul.f32 %v2126_v5, %v2126_v5  ;;  %v1563_v52 = vpop.f32.mrf.mxu1 }
 0x14f   : > { %v2164_v60 = vmul.f32 %v2127_v19, %v2127_v19  ;;  %v1573_v29 = vadd.f32 %v1563_v52, %v1399_v54 }
 0x150   : > { %2893 = vst [vmem:[%s3595_s27 + $0x10] sm:$0xff] %v2882_v38   ;;  %v2170_v43 = vadd.f32 %v2169_v53, %v2163_v32  ;;  %v2150_v63 = vadd.f32 %v2149_v59, %v2127_v19 }
 0x151   : > { %v1708_v22 = vadd.f32 %v1698_v42, %v1573_v29 }
 0x152   : > { %v2171_v3 = vadd.f32 %v2170_v43, %v2164_v60 }
 0x153   : > { %v1954_v8 = vadd.f32 %v1944_v14, %v1708_v22 }
 0x155   : > { %v2128_v47 = vadd.f32 %v2118_v40, %v1954_v8 }
 0x157   : > { %v2887_v44 = vpack.c.bf16 %v2128_v47, %v2127_v19  ;;  %v2151_v4 = vadd.f32 %v2150_v63, %v2128_v47  ;;  %v2165_v21 = vmul.f32 %v2128_v47, %v2128_v47 }
 0x159   : > { %2894 = vst [vmem:[%s3595_s27 + $0x18] sm:$0xff] %v2887_v44   ;;  %v2152_v55 = vrot.slane %v2151_v4, 4  ;;  %v2172_v58 = vadd.f32 %v2171_v3, %v2165_v21 }
 0x15b   : > { %v2153_v13 = vadd.f32 %v2152_v55, %v2151_v4  ;;  %v2173_v49 = vrot.slane %v2172_v58, 4 }
 0x15d   : > { %v2154_v61 = vrot.slane %v2153_v13, 2  ;;  %v2174_v9 = vadd.f32 %v2173_v49, %v2172_v58 }
 0x15f   : > { %v2155_v23 = vadd.f32 %v2154_v61, %v2153_v13  ;;  %v2175_v0 = vrot.slane %v2174_v9, 2 }
 0x161   : > { %v2156_v1 = vrot.slane %v2155_v23, 1  ;;  %v2176_v2 = vadd.f32 %v2175_v0, %v2174_v9 }
 0x163   : > { %v2177_v6 = vrot.slane %v2176_v2, 1  ;;  %v2157_v12 = vadd.f32 %v2156_v1, %v2155_v23 }
 0x165   : > { %v2178_v15 = vadd.f32 %v2177_v6, %v2176_v2 }
 0x167   : > { %v2180_v25 = vsel %vm302_vm0, %v2157_v12, %v2178_v15 }
 0x168   : > { %2181 = vst [vmem:[%s238_s29] sm:$0x3] %v2180_v25 }
 0x169 PF: > { %s16_s18 = sadd.s32 1, %s2928_s18  }
 0x16a   : > { %p13_p5 = scmp.ge.s32.totalorder %s16_s18, 4  }
 0x16c   :  { %15 = sbr.rel (!%p13_p5) target bundleno = 1 (0x1), region = 89 }

</bundles_post_ra>
